<compile_context>
chip_gen: v6e
topology: v6e:2x2x1
jax: 0.10.0
libtpu: 0.0.40
codegen_flags: <defaults>
</compile_context>

<pallas_src>
import functools
import math

import jax
import jax.numpy as jnp
from jax.experimental import pallas as pl
from jax.experimental.pallas import tpu as pltpu


def _round_up(n, m):
    return ((n + m - 1) // m) * m


def _generator_fused_kernel(z_ref, w1_ref, b1_ref, w2_ref, b2_ref,
                            w3_ref, b3_ref, w4_ref, b4_ref, o_ref):
    """Fused 4-layer MLP for one batch tile: 3x(Linear+ReLU), Linear+Tanh.

    z_ref : (TM, latent_dim)  f32 batch tile
    wK_ref: (in_K, out_K)     bf16 full weight, resident in VMEM
    bK_ref: (1, out_K)        f32 lane-dense bias row
    o_ref : (TM, out_pad)     f32 padded, lane-dense output tile
    """
    cd = w1_ref.dtype  # bf16 compute dtype for MXU operands

    h = jnp.dot(z_ref[...].astype(cd), w1_ref[...],
                preferred_element_type=jnp.float32)
    h = jnp.maximum(h + b1_ref[...], 0.0)

    h = jnp.dot(h.astype(cd), w2_ref[...], preferred_element_type=jnp.float32)
    h = jnp.maximum(h + b2_ref[...], 0.0)

    h = jnp.dot(h.astype(cd), w3_ref[...], preferred_element_type=jnp.float32)
    h = jnp.maximum(h + b3_ref[...], 0.0)

    h = jnp.dot(h.astype(cd), w4_ref[...], preferred_element_type=jnp.float32)
    o_ref[...] = jnp.tanh(h + b4_ref[...]).astype(o_ref.dtype)


def prepare_generator_params(params, *, compute_dtype=jnp.bfloat16):
    """One-time parameter prep (outside the jitted hot path).

    * final-layer weight/bias padded to a multiple of 128 output lanes
      (zero columns -> tanh(0)=0, sliced off by the wrapper)
    * weights cast to bf16, stored (in, out)
    * biases kept f32, reshaped to lane-dense (1, out)
    """
    (w1, b1), (w2, b2), (w3, b3), (w4, b4) = params
    n = w4.shape[1]
    n_pad = _round_up(n, 128)
    if n_pad != n:
        w4 = jnp.pad(w4, ((0, 0), (0, n_pad - n)))
        b4 = jnp.pad(b4, (0, n_pad - n))
    weights = tuple(w.astype(compute_dtype) for w in (w1, w2, w3, w4))
    biases = tuple(b.reshape(1, -1).astype(jnp.float32)
                   for b in (b1, b2, b3, b4))
    return weights, biases


@functools.partial(jax.jit, static_argnames=("output_dim", "batch_tile"))
def generator_forward(prepared_params, z, *, output_dim, batch_tile=128):
    """Forward pass of the Generator as one fused Pallas kernel.

    prepared_params: output of prepare_generator_params
    z              : (batch, latent_dim) f32
    output_dim     : true (unpadded) number of output features
    batch_tile     : per-grid-step batch tile (rounded to a multiple of 8)
    """
    weights, biases = prepared_params
    w1, w2, w3, w4 = weights
    b1, b2, b3, b4 = biases

    M, K = z.shape
    n_pad = w4.shape[1]

    # Batch tiling: cdiv grid with an 8-aligned tile; pad the (cheap, narrow)
    # z input so every tile is full.  Keeps per-step VMEM bounded for large
    # batches and gives >=2 parallel steps (both v7x TensorCores) when M is big.
    batch_tile = max(8, _round_up(batch_tile, 8))
    tm = min(_round_up(M, 8), batch_tile)
    m_pad = _round_up(M, tm)
    if m_pad != M:
        z = jnp.pad(z, ((0, m_pad - M), (0, 0)))
    grid = (m_pad // tm,)

    def resident(shape):
        # Constant block index + single buffer: DMA'd once, stays resident,
        # no wasted double-buffer VMEM.
        return pl.BlockSpec(shape, lambda i: (0, 0),
                            pipeline_mode=pl.Buffered(1))

    # Advisory cost estimate for the XLA scheduler around this custom call.
    param_bytes = (sum(w.size * w.dtype.itemsize for w in weights)
                   + sum(b.size * b.dtype.itemsize for b in biases))
    flops = 2 * m_pad * sum(w.shape[0] * w.shape[1] for w in weights)
    bytes_accessed = (param_bytes
                      + z.size * z.dtype.itemsize
                      + m_pad * n_pad * jnp.dtype(z.dtype).itemsize)
    cost = pl.CostEstimate(flops=flops,
                           transcendentals=m_pad * n_pad,
                           bytes_accessed=bytes_accessed)

    # VMEM budget: single-buffered params + double-buffered z/out tiles +
    # headroom for one tile's f32/bf16 intermediate activations.
    act_bytes = tm * (w1.shape[1] + w2.shape[1] + w3.shape[1] + n_pad) * 6
    vmem_needed = (param_bytes
                   + 2 * (tm * K * 4 + tm * n_pad * 4)
                   + act_bytes
                   + 4 * 1024 * 1024)
    vmem_limit = int(min(32 * 1024 * 1024,
                         max(16 * 1024 * 1024, vmem_needed)))

    out_padded = pl.pallas_call(
        _generator_fused_kernel,
        out_shape=jax.ShapeDtypeStruct((m_pad, n_pad), z.dtype),
        grid=grid,
        in_specs=[
            pl.BlockSpec((tm, K), lambda i: (i, 0)),        # z batch tile
            resident(w1.shape), resident(b1.shape),
            resident(w2.shape), resident(b2.shape),
            resident(w3.shape), resident(b3.shape),
            resident(w4.shape), resident(b4.shape),
        ],
        out_specs=pl.BlockSpec((tm, n_pad), lambda i: (i, 0)),
        compiler_params=pltpu.CompilerParams(
            dimension_semantics=("parallel",),
            vmem_limit_bytes=vmem_limit,
        ),
        cost_estimate=cost,
    )(z, w1, b1, w2, b2, w3, b3, w4, b4)

    return out_padded[:M, :output_dim]


def init_linear_params(key, in_features, out_features):
    """PyTorch-style init (uniform +/- 1/sqrt(fan_in)), stored (in, out), f32."""
    kw, kb = jax.random.split(key)
    bound = 1.0 / math.sqrt(in_features)
    w = jax.random.uniform(
        kw, (in_features, out_features), jnp.float32, minval=-bound, maxval=bound
    )
    b = jax.random.uniform(
        kb, (out_features,), jnp.float32, minval=-bound, maxval=bound
    )
    return w, b


def init_generator_params(key, latent_dim, output_dim):
    dims = [latent_dim, 256, 512, 1024, output_dim]
    keys = jax.random.split(key, len(dims) - 1)
    return [
        init_linear_params(keys[i], dims[i], dims[i + 1])
        for i in range(len(dims) - 1)
    ]


def _reference_forward(params, z):
    """Plain-JAX f32 reference (same math, no Pallas)."""
    h = z
    n_layers = len(params)
    for i, (w, b) in enumerate(params):
        h = h @ w + b
        h = jnp.tanh(h) if i == n_layers - 1 else jnp.maximum(h, 0.0)
    return h


if __name__ == "__main__":
    latent_dim = 32
    output_dim = 64
    batch = 8

    key = jax.random.PRNGKey(0)
    k_params, k_z = jax.random.split(key)

    params = init_generator_params(k_params, latent_dim, output_dim)
    prepared = prepare_generator_params(params)   # one-time, outside hot path
    z = jax.random.normal(k_z, (batch, latent_dim), dtype=jnp.float32)

    out = jax.block_until_ready(
        generator_forward(prepared, z, output_dim=output_dim))

    assert out.shape == (batch, output_dim), out.shape
    assert out.dtype == jnp.float32
    # Tanh output must be in [-1, 1].
    assert bool(jnp.all(jnp.abs(out) <= 1.0 + 1e-6))
    # Numerical check vs plain-JAX f32 reference (tolerance absorbs the bf16
    # weight storage and any reduced-precision matmul passes on either path).
    ref = _reference_forward(params, z)
    assert bool(jnp.allclose(out, ref, atol=5e-2, rtol=5e-2)), (
        float(jnp.max(jnp.abs(out - ref)))
    )

    print("KERNEL_OK")
</pallas_src>

<mosaic_0001>
module attributes {stable_mosaic.version = 11 : i64} {
  func.func @_generator_fused_kernel(%arg0: i32, %arg1: memref<8x32xf32, #tpu.memory_space<vmem>>, %arg2: memref<32x256xbf16, #tpu.memory_space<vmem>>, %arg3: memref<1x256xf32, #tpu.memory_space<vmem>>, %arg4: memref<256x512xbf16, #tpu.memory_space<vmem>>, %arg5: memref<1x512xf32, #tpu.memory_space<vmem>>, %arg6: memref<512x1024xbf16, #tpu.memory_space<vmem>>, %arg7: memref<1x1024xf32, #tpu.memory_space<vmem>>, %arg8: memref<1024x128xbf16, #tpu.memory_space<vmem>>, %arg9: memref<1x128xf32, #tpu.memory_space<vmem>>, %arg10: memref<8x128xf32, #tpu.memory_space<vmem>>) attributes {dimension_semantics = [#tpu.dimension_semantics<parallel>], iteration_bounds = array<i64: 1>, scalar_prefetch = 0 : i64, scratch_operands = 0 : i64, tpu.core_type = #tpu.core_type<tc>, window_params = [{transform_indices = @transform_0, window_bounds = array<i64: 8, 32>}, {pipeline_mode = #tpu.pipeline_mode<synchronous>, transform_indices = @transform_1, window_bounds = array<i64: 32, 256>}, {pipeline_mode = #tpu.pipeline_mode<synchronous>, transform_indices = @transform_2, window_bounds = array<i64: 1, 256>}, {pipeline_mode = #tpu.pipeline_mode<synchronous>, transform_indices = @transform_3, window_bounds = array<i64: 256, 512>}, {pipeline_mode = #tpu.pipeline_mode<synchronous>, transform_indices = @transform_4, window_bounds = array<i64: 1, 512>}, {pipeline_mode = #tpu.pipeline_mode<synchronous>, transform_indices = @transform_5, window_bounds = array<i64: 512, 1024>}, {pipeline_mode = #tpu.pipeline_mode<synchronous>, transform_indices = @transform_6, window_bounds = array<i64: 1, 1024>}, {pipeline_mode = #tpu.pipeline_mode<synchronous>, transform_indices = @transform_7, window_bounds = array<i64: 1024, 128>}, {pipeline_mode = #tpu.pipeline_mode<synchronous>, transform_indices = @transform_8, window_bounds = array<i64: 1, 128>}, {transform_indices = @transform_9, window_bounds = array<i64: 8, 128>}]} {
    %c0 = arith.constant 0 : index
    %c0_0 = arith.constant 0 : index
    %0 = vector.load %arg1[%c0, %c0_0] : memref<8x32xf32, #tpu.memory_space<vmem>>, vector<8x32xf32>
    %1 = arith.truncf %0 : vector<8x32xf32> to vector<8x32xbf16>
    %c0_1 = arith.constant 0 : index
    %c0_2 = arith.constant 0 : index
    %2 = vector.load %arg2[%c0_1, %c0_2] : memref<32x256xbf16, #tpu.memory_space<vmem>>, vector<32x256xbf16>
    %cst = arith.constant dense<0.000000e+00> : vector<8x256xf32>
    %3 = tpu.matmul %1, %2, %cst {dimension_numbers = #tpu.dot_dimension_numbers<[1], [0], [0], [1], [0, 0, 1, 1], [], []>} : vector<8x32xbf16>, vector<32x256xbf16>, vector<8x256xf32> -> vector<8x256xf32>
    %c0_3 = arith.constant 0 : index
    %c0_4 = arith.constant 0 : index
    %4 = vector.load %arg3[%c0_3, %c0_4] : memref<1x256xf32, #tpu.memory_space<vmem>>, vector<1x256xf32>
    %5 = vector.broadcast %4 : vector<1x256xf32> to vector<8x256xf32>
    %6 = arith.addf %3, %5 : vector<8x256xf32>
    %cst_5 = arith.constant 0.000000e+00 : f32
    %7 = vector.broadcast %cst_5 : f32 to vector<8x256xf32>
    %8 = arith.maximumf %6, %7 : vector<8x256xf32>
    %9 = arith.truncf %8 : vector<8x256xf32> to vector<8x256xbf16>
    %c0_6 = arith.constant 0 : index
    %c0_7 = arith.constant 0 : index
    %10 = vector.load %arg4[%c0_6, %c0_7] : memref<256x512xbf16, #tpu.memory_space<vmem>>, vector<256x512xbf16>
    %cst_8 = arith.constant dense<0.000000e+00> : vector<8x512xf32>
    %11 = tpu.matmul %9, %10, %cst_8 {dimension_numbers = #tpu.dot_dimension_numbers<[1], [0], [0], [1], [0, 0, 1, 1], [], []>} : vector<8x256xbf16>, vector<256x512xbf16>, vector<8x512xf32> -> vector<8x512xf32>
    %c0_9 = arith.constant 0 : index
    %c0_10 = arith.constant 0 : index
    %12 = vector.load %arg5[%c0_9, %c0_10] : memref<1x512xf32, #tpu.memory_space<vmem>>, vector<1x512xf32>
    %13 = vector.broadcast %12 : vector<1x512xf32> to vector<8x512xf32>
    %14 = arith.addf %11, %13 : vector<8x512xf32>
    %cst_11 = arith.constant 0.000000e+00 : f32
    %15 = vector.broadcast %cst_11 : f32 to vector<8x512xf32>
    %16 = arith.maximumf %14, %15 : vector<8x512xf32>
    %17 = arith.truncf %16 : vector<8x512xf32> to vector<8x512xbf16>
    %c0_12 = arith.constant 0 : index
    %c0_13 = arith.constant 0 : index
    %18 = vector.load %arg6[%c0_12, %c0_13] : memref<512x1024xbf16, #tpu.memory_space<vmem>>, vector<512x1024xbf16>
    %cst_14 = arith.constant dense<0.000000e+00> : vector<8x1024xf32>
    %19 = tpu.matmul %17, %18, %cst_14 {dimension_numbers = #tpu.dot_dimension_numbers<[1], [0], [0], [1], [0, 0, 1, 1], [], []>} : vector<8x512xbf16>, vector<512x1024xbf16>, vector<8x1024xf32> -> vector<8x1024xf32>
    %c0_15 = arith.constant 0 : index
    %c0_16 = arith.constant 0 : index
    %20 = vector.load %arg7[%c0_15, %c0_16] : memref<1x1024xf32, #tpu.memory_space<vmem>>, vector<1x1024xf32>
    %21 = vector.broadcast %20 : vector<1x1024xf32> to vector<8x1024xf32>
    %22 = arith.addf %19, %21 : vector<8x1024xf32>
    %cst_17 = arith.constant 0.000000e+00 : f32
    %23 = vector.broadcast %cst_17 : f32 to vector<8x1024xf32>
    %24 = arith.maximumf %22, %23 : vector<8x1024xf32>
    %25 = arith.truncf %24 : vector<8x1024xf32> to vector<8x1024xbf16>
    %c0_18 = arith.constant 0 : index
    %c0_19 = arith.constant 0 : index
    %26 = vector.load %arg8[%c0_18, %c0_19] : memref<1024x128xbf16, #tpu.memory_space<vmem>>, vector<1024x128xbf16>
    %cst_20 = arith.constant dense<0.000000e+00> : vector<8x128xf32>
    %27 = tpu.matmul %25, %26, %cst_20 {dimension_numbers = #tpu.dot_dimension_numbers<[1], [0], [0], [1], [0, 0, 1, 1], [], []>} : vector<8x1024xbf16>, vector<1024x128xbf16>, vector<8x128xf32> -> vector<8x128xf32>
    %c0_21 = arith.constant 0 : index
    %c0_22 = arith.constant 0 : index
    %28 = vector.load %arg9[%c0_21, %c0_22] : memref<1x128xf32, #tpu.memory_space<vmem>>, vector<1x128xf32>
    %29 = vector.broadcast %28 : vector<1x128xf32> to vector<8x128xf32>
    %30 = arith.addf %27, %29 : vector<8x128xf32>
    %31 = math.tanh %30 : vector<8x128xf32>
    %c0_23 = arith.constant 0 : index
    %c0_24 = arith.constant 0 : index
    %32 = vector.load %arg10[%c0_23, %c0_24] : memref<8x128xf32, #tpu.memory_space<vmem>>, vector<8x128xf32>
    tpu.vector_store %arg10[%c0_23, %c0_24], %31 {strides = array<i32>} : memref<8x128xf32, #tpu.memory_space<vmem>>, vector<8x128xf32>,
    return
  }
  func.func @transform_0(%arg0: i32) -> (i32, i32) {
    %c0_i32 = arith.constant 0 : i32
    %c0_i32_0 = arith.constant 0 : i32
    return %arg0, %c0_i32 : i32, i32
  }
  func.func @transform_1(%arg0: i32) -> (i32, i32) {
    %c0_i32 = arith.constant 0 : i32
    %c0_i32_0 = arith.constant 0 : i32
    %c0_i32_1 = arith.constant 0 : i32
    return %c0_i32, %c0_i32_0 : i32, i32
  }
  func.func @transform_2(%arg0: i32) -> (i32, i32) {
    %c0_i32 = arith.constant 0 : i32
    %c0_i32_0 = arith.constant 0 : i32
    %c0_i32_1 = arith.constant 0 : i32
    return %c0_i32, %c0_i32_0 : i32, i32
  }
  func.func @transform_3(%arg0: i32) -> (i32, i32) {
    %c0_i32 = arith.constant 0 : i32
    %c0_i32_0 = arith.constant 0 : i32
    %c0_i32_1 = arith.constant 0 : i32
    return %c0_i32, %c0_i32_0 : i32, i32
  }
  func.func @transform_4(%arg0: i32) -> (i32, i32) {
    %c0_i32 = arith.constant 0 : i32
    %c0_i32_0 = arith.constant 0 : i32
    %c0_i32_1 = arith.constant 0 : i32
    return %c0_i32, %c0_i32_0 : i32, i32
  }
  func.func @transform_5(%arg0: i32) -> (i32, i32) {
    %c0_i32 = arith.constant 0 : i32
    %c0_i32_0 = arith.constant 0 : i32
    %c0_i32_1 = arith.constant 0 : i32
    return %c0_i32, %c0_i32_0 : i32, i32
  }
  func.func @transform_6(%arg0: i32) -> (i32, i32) {
    %c0_i32 = arith.constant 0 : i32
    %c0_i32_0 = arith.constant 0 : i32
    %c0_i32_1 = arith.constant 0 : i32
    return %c0_i32, %c0_i32_0 : i32, i32
  }
  func.func @transform_7(%arg0: i32) -> (i32, i32) {
    %c0_i32 = arith.constant 0 : i32
    %c0_i32_0 = arith.constant 0 : i32
    %c0_i32_1 = arith.constant 0 : i32
    return %c0_i32, %c0_i32_0 : i32, i32
  }
  func.func @transform_8(%arg0: i32) -> (i32, i32) {
    %c0_i32 = arith.constant 0 : i32
    %c0_i32_0 = arith.constant 0 : i32
    %c0_i32_1 = arith.constant 0 : i32
    return %c0_i32, %c0_i32_0 : i32, i32
  }
  func.func @transform_9(%arg0: i32) -> (i32, i32) {
    %c0_i32 = arith.constant 0 : i32
    %c0_i32_0 = arith.constant 0 : i32
    return %arg0, %c0_i32 : i32, i32
  }
}

</mosaic_0001>

<bundles_post_ra>
// kernel: generator_forward.1
= control target key start
LH: loop header
LB: loop body
LE: loop exit
PB: predicated region body
PF: predicated region fallthrough
CT: control target
= control target key end

     0   :  { %14 = vsyncpa [#allocation3], 0  ;;  %s4286_s0 = inlined_call_operand.vmem [shape: f32[8,32], index: 0, kind: input, shape index: {}]   ;;  %s4287_s1 = inlined_call_operand.hbm [shape: bf16[32,256], index: 1, kind: input, shape index: {}]   ;;  %s4288_s2 = inlined_call_operand.vmem [shape: f32[1,256], index: 2, kind: input, shape index: {}]   ;;  %s4289_s3 = inlined_call_operand.hbm [shape: bf16[256,512], index: 3, kind: input, shape index: {}]   ;;  %s4290_s4 = inlined_call_operand.vmem [shape: f32[1,512], index: 4, kind: input, shape index: {}]   ;;  %s4291_s5 = inlined_call_operand.hbm [shape: bf16[512,1024], index: 5, kind: input, shape index: {}]   ;;  %s4292_s6 = inlined_call_operand.hbm [shape: f32[1,1024], index: 6, kind: input, shape index: {}]   ;;  %s4293_s7 = inlined_call_operand.hbm [shape: bf16[1024,128], index: 7, kind: input, shape index: {}]   ;;  %s4294_s8 = inlined_call_operand.hbm [shape: f32[1,128], index: 8, kind: input, shape index: {}]   ;;  %s4295_s9 = inlined_call_operand.hbm [shape: f32[8,128], index: 9, kind: output, shape index: {}]  }
   0x1   :  { %15 = vsyncpa [#allocation6], 0 }
   0x2   :  { %16 = vsyncpa [#allocation9], 0 }
   0x3   :  { %17 = vsyncpa [#allocation12], 0 }
   0x4   :  { %18 = vsyncpa [#allocation4], 0  ;;  %s4128_s30 = smov [#allocation5]  }
   0x5   :  { %s40_s10 = sshll.u32 %s4128_s30, 4  ;;  %s41_s10 = int_to_ptr.vmem [resolvable:$true] %s40_s10 }
   0x6   :  { %s3986_s11 = scalar_lea.vmem %s41_s10, 8192  ;;  %p3991_p1 = scmp.lt.s32.totalorder %s41_s10, %s41_s10 }
   0x7   :  { %p3987_p0 = scmp.ne.s32.totalorder %s41_s10, %s3986_s11  ;;  %p3992_p2 = scmp.lt.s32.totalorder %s3986_s11, %s3986_s11 }
   0x9   :  { %p3993_p3 = por %p3992_p2, %p3991_p1 }
   0xb   :  { %p3994_p4 = pnand %p3993_p3, %p3987_p0 }
   0xd   :  { %3997 = shalt.err (!%p3994_p4)
}
   0xe   :  { %s4129_s12 = smov 256   ;;  %s4130_s13 = smov 16  }
   0xf   :  { %46 = dma.hbm_to_vmem [thread:$0]  %s4289_s3, 8192, %s41_s10, [#allocation6], %s4129_s12, %s4129_s12, %s4130_s13  }
  0x10   :  { %s4131_s16 = smov [#allocation8]   ;;  %s4132_s18 = smov [#allocation2]  }
  0x11   :  { %s67_s17 = sshll.u32 %s4131_s16, 4  ;;  %s26_s19 = sshll.u32 %s4132_s18, 4  ;;  %s68_s17 = int_to_ptr.vmem [resolvable:$true] %s67_s17  ;;  %s27_s19 = int_to_ptr.vmem [resolvable:$true] %s26_s19 }
  0x12   :  { %s4006_s20 = scalar_lea.vmem %s68_s17, 128  ;;  %p4011_p6 = scmp.lt.s32.totalorder %s68_s17, %s68_s17 }
  0x13   :  { %p4007_p5 = scmp.ne.s32.totalorder %s68_s17, %s4006_s20  ;;  %p4012_p7 = scmp.lt.s32.totalorder %s4006_s20, %s4006_s20 }
  0x15   :  { %p4013_p8 = por %p4012_p7, %p4011_p6 }
  0x17   :  { %p4014_p9 = pnand %p4013_p8, %p4007_p5 }
  0x19   :  { %4017 = shalt.err (!%p4014_p9)
}
  0x1a   :  { %70 = dma.hbm_to_vmem [thread:$0]  %s4292_s6, 128, %s68_s17, [#allocation9]  }
  0x1b   :  { %s4026_s23 = scalar_lea.vmem %s27_s19, 512  ;;  %p4031_p11 = scmp.lt.s32.totalorder %s27_s19, %s27_s19 }
  0x1c   :  { %p4027_p10 = scmp.ne.s32.totalorder %s27_s19, %s4026_s23  ;;  %p4032_p12 = scmp.lt.s32.totalorder %s4026_s23, %s4026_s23 }
  0x1e   :  { %p4033_p13 = por %p4032_p12, %p4031_p11 }
  0x20   :  { %p4034_p0 = pnand %p4033_p13, %p4027_p10 }
  0x22   :  { %4037 = shalt.err (!%p4034_p0)
}
  0x23   :  { %s4133_s3 = smov 128   ;;  %s4134_s24 = smov 8  }
  0x24   :  { %32 = dma.hbm_to_vmem [thread:$0]  %s4287_s1, 512, %s27_s19, [#allocation3], %s4133_s3, %s4133_s3, %s4134_s24  }
  0x25   :  { %s4135_s27 = smov [#allocation7]  }
  0x26   :  { %s54_s28 = sshll.u32 %s4135_s27, 4  ;;  %s55_s28 = int_to_ptr.vmem [resolvable:$true] %s54_s28 }
  0x27   :  { %s4046_s29 = scalar_lea.vmem %s55_s28, 32768  ;;  %p4051_p2 = scmp.lt.s32.totalorder %s55_s28, %s55_s28 }
  0x28   :  { %p4047_p1 = scmp.ne.s32.totalorder %s55_s28, %s4046_s29  ;;  %p4052_p3 = scmp.lt.s32.totalorder %s4046_s29, %s4046_s29 }
  0x2a   :  { %p4053_p4 = por %p4052_p3, %p4051_p2 }
  0x2c   :  { %p4054_p5 = pnand %p4053_p4, %p4047_p1 }
  0x2e   :  { %4057 = shalt.err (!%p4054_p5)
}
  0x2f   :  { %s4136_s6 = smov 512   ;;  %s4137_s30 = smov 32  }
  0x30   :  { %60 = dma.hbm_to_vmem [thread:$0]  %s4291_s5, 32768, %s55_s28, [#allocation6], %s4136_s6, %s4136_s6, %s4137_s30  }
  0x31   :  { %s4138_s12 = smov [#allocation10]  }
  0x32   :  { %s76_s13 = sshll.u32 %s4138_s12, 4  ;;  %s77_s13 = int_to_ptr.vmem [resolvable:$true] %s76_s13 }
  0x33   :  { %s4066_s1 = scalar_lea.vmem %s77_s13, 8192  ;;  %p4071_p7 = scmp.lt.s32.totalorder %s77_s13, %s77_s13 }
  0x34   :  { %p4067_p6 = scmp.ne.s32.totalorder %s77_s13, %s4066_s1  ;;  %p4072_p8 = scmp.lt.s32.totalorder %s4066_s1, %s4066_s1 }
  0x36   :  { %p4073_p9 = por %p4072_p8, %p4071_p7 }
  0x38   :  { %p4074_p10 = pnand %p4073_p9, %p4067_p6 }
  0x3a   :  { %4077 = shalt.err (!%p4074_p10)
}
  0x3b   :  { %s4139_s14 = smov 64   ;;  %s4140_s15 = smov 4  }
  0x3c   :  { %82 = dma.hbm_to_vmem [thread:$0]  %s4293_s7, 8192, %s77_s13, [#allocation9], %s4139_s14, %s4139_s14, %s4140_s15  }
  0x3d   :  { %s4141_s18 = smov [#allocation11]  }
  0x3e   :  { %s89_s19 = sshll.u32 %s4141_s18, 4  ;;  %s90_s19 = int_to_ptr.vmem [resolvable:$true] %s89_s19 }
  0x3f   :  { %s4086_s5 = scalar_lea.vmem %s90_s19, 16  ;;  %s4090_s20 = scalar_lea.vmem %s90_s19, 32 }
  0x40   :  { %p4087_p11 = scmp.ne.s32.totalorder %s90_s19, %s4086_s5  ;;  %p4091_p12 = scmp.lt.s32.totalorder %s90_s19, %s90_s19 }
  0x41   :  { %p4092_p13 = scmp.lt.s32.totalorder %s4090_s20, %s4086_s5 }
  0x43   :  { %p4093_p0 = por %p4092_p13, %p4091_p12 }
  0x45   :  { %p4094_p1 = pnand %p4093_p0, %p4087_p11 }
  0x47   :  { %4097 = shalt.err (!%p4094_p1)
}
  0x48   :  { %92 = dma.hbm_to_vmem [thread:$0]  %s4294_s8, 16, %s90_s19, [#allocation12]  }
  0x49   :  { %4118 = dma.done.wait [#allocation3], 512  }
  0x4a   :  { %4119 = vsyncadd [#allocation3], 4294966784 }
  0x4b   :  { %4120 = dma.done.wait [#allocation6], 40960  }
  0x4c   :  { %4121 = vsyncadd [#allocation6], 4294926336 }
  0x4d   :  { %4122 = dma.done.wait [#allocation9], 8320  }
  0x4e   :  { %4123 = vsyncadd [#allocation9], 4294958976 }
  0x4f   :  { %4124 = dma.done.wait [#allocation12], 16  }
  0x50   :  { %4125 = vsyncadd [#allocation12], 4294967280  ;;  %v4142_v0 = vmov 0   ;;  %v3810_v1 = vld [vmem:[#allocation2 + $0x14] ss:$8 sps:$4 sm:$0xff]   ;;  %v112_v5 = vld [vmem:[%s4286_s0] sm:$0xff] }
  0x51   :  { %186 = vmatprep.mubr.bf16.mxu0 %v4142_v0  ;;  %v3812_v2 = vld [vmem:[#allocation2 + $0x10] ss:$8 sps:$4 sm:$0xff]   ;;  %166 = vmatprep.subr.bf16.mxu0 %v3810_v1  ;;  %v3813_v3 = vld [vmem:[#allocation2 + $0x4] ss:$8 sps:$4 sm:$0xff]   ;;  %v3815_v4 = vld [vmem:[#allocation2] ss:$8 sps:$4 sm:$0xff]   ;;  %v113_v9 = vpack.c.bf16 %v112_v5, %v112_v5 }
  0x52   :  { %167 = vmatpush1.bf16.msra.mxu0 %v3812_v2  ;;  %v3816_v6 = vld [vmem:[#allocation5 + $0xe4] ss:$16 sps:$4 sm:$0xff]   ;;  %v3820_v7 = vld [vmem:[#allocation5 + $0xec] ss:$16 sps:$4 sm:$0xff]   ;;  %v3821_v8 = vld [vmem:[#allocation5 + $0xe0] ss:$16 sps:$4 sm:$0xff]  }
  0x53   :  { %168 = vmatprep.subr.bf16.mxu0 %v3813_v3  ;;  %605 = vmatprep.subr.bf16.mxu1 %v3816_v6  ;;  %v3822_v10 = vld [vmem:[#allocation5 + $0xc4] ss:$16 sps:$4 sm:$0xff]   ;;  %vm150_vm0 = vcmask 261120   ;;  %v3818_v11 = vld [vmem:[#allocation5 + $0xe8] ss:$16 sps:$4 sm:$0xff]  }
  0x54   :  { %606 = vmatpush1.bf16.msra.mxu1 %v3821_v8  ;;  %v3826_v12 = vld [vmem:[#allocation5 + $0xcc] ss:$16 sps:$4 sm:$0xff]   ;;  %v3827_v13 = vld [vmem:[#allocation5 + $0xc0] ss:$16 sps:$4 sm:$0xff]   ;;  %v3828_v14 = vld [vmem:[#allocation5 + $0xa4] ss:$16 sps:$4 sm:$0xff]  }
  0x55   :  { %607 = vmatprep.subr.bf16.mxu1 %v3822_v10  ;;  %v3824_v15 = vld [vmem:[#allocation5 + $0xc8] ss:$16 sps:$4 sm:$0xff]   ;;  %v3832_v16 = vld [vmem:[#allocation5 + $0xac] ss:$16 sps:$4 sm:$0xff]   ;;  %v3833_v17 = vld [vmem:[#allocation5 + $0xa0] ss:$16 sps:$4 sm:$0xff]  }
  0x56   :  { %169 = vmatpush1.bf16.msra.mxu0 %v3815_v4  ;;  %v3834_v18 = vld [vmem:[#allocation5 + $0x84] ss:$16 sps:$4 sm:$0xff]   ;;  %v3830_v19 = vld [vmem:[#allocation5 + $0xa8] ss:$16 sps:$4 sm:$0xff]   ;;  %v3838_v20 = vld [vmem:[#allocation5 + $0x8c] ss:$16 sps:$4 sm:$0xff]  }
  0x57   :  { %646 = vmatprep.subr.bf16.mxu0 %v3820_v7  ;;  %v3839_v21 = vld [vmem:[#allocation5 + $0x80] ss:$16 sps:$4 sm:$0xff]   ;;  %v3840_v22 = vld [vmem:[#allocation5 + $0x64] ss:$16 sps:$4 sm:$0xff]   ;;  %v3836_v23 = vld [vmem:[#allocation5 + $0x88] ss:$16 sps:$4 sm:$0xff]  }
  0x58   :  { %608 = vmatpush1.bf16.msra.mxu1 %v3827_v13  ;;  %v3844_v24 = vld [vmem:[#allocation5 + $0x6c] ss:$16 sps:$4 sm:$0xff]   ;;  %v3845_v25 = vld [vmem:[#allocation5 + $0x60] ss:$16 sps:$4 sm:$0xff]   ;;  %v3846_v26 = vld [vmem:[#allocation5 + $0x44] ss:$16 sps:$4 sm:$0xff]  }
  0x59   :  { %3320 = vmatmul.mubr.msk.bf16.vlgmr.msra.gmra.mxu0 %vm150_vm0, %v113_v9  ;;  %609 = vmatprep.subr.bf16.mxu1 %v3828_v14  ;;  %v3842_v27 = vld [vmem:[#allocation5 + $0x68] ss:$16 sps:$4 sm:$0xff]   ;;  %v3850_v28 = vld [vmem:[#allocation5 + $0x4c] ss:$16 sps:$4 sm:$0xff]   ;;  %v3851_v29 = vld [vmem:[#allocation5 + $0x40] ss:$16 sps:$4 sm:$0xff]  }
  0x5a   :  { %647 = vmatpush1.bf16.msra.mxu0 %v3818_v11  ;;  %v3852_v30 = vld [vmem:[#allocation5 + $0x24] ss:$16 sps:$4 sm:$0xff]   ;;  %v3848_v31 = vld [vmem:[#allocation5 + $0x48] ss:$16 sps:$4 sm:$0xff]   ;;  %v3856_v32 = vld [vmem:[#allocation5 + $0x2c] ss:$16 sps:$4 sm:$0xff]  }
  0x5b   :  { %648 = vmatprep.subr.bf16.mxu0 %v3826_v12  ;;  %v3857_v33 = vld [vmem:[#allocation5 + $0x20] ss:$16 sps:$4 sm:$0xff]   ;;  %v3858_v34 = vld [vmem:[#allocation5 + $0x4] ss:$16 sps:$4 sm:$0xff]   ;;  %v3854_v35 = vld [vmem:[#allocation5 + $0x28] ss:$16 sps:$4 sm:$0xff]  }
  0x5c   :  { %610 = vmatpush1.bf16.msra.mxu1 %v3833_v17  ;;  %v3862_v36 = vld [vmem:[#allocation5 + $0xc] ss:$16 sps:$4 sm:$0xff]   ;;  %v3863_v37 = vld [vmem:[#allocation5] ss:$16 sps:$4 sm:$0xff]   ;;  %v3864_v38 = vld [vmem:[#allocation5 + $0x1e4] ss:$16 sps:$4 sm:$0xff]  }
  0x5d   :  { %611 = vmatprep.subr.bf16.mxu1 %v3834_v18  ;;  %v3860_v39 = vld [vmem:[#allocation5 + $0x8] ss:$16 sps:$4 sm:$0xff]   ;;  %v3868_v40 = vld [vmem:[#allocation5 + $0x1ec] ss:$16 sps:$4 sm:$0xff]   ;;  %v3869_v41 = vld [vmem:[#allocation5 + $0x1e0] ss:$16 sps:$4 sm:$0xff]  }
  0x5e   :  { %649 = vmatpush1.bf16.msra.mxu0 %v3824_v15  ;;  %v3870_v42 = vld [vmem:[#allocation5 + $0x1c4] ss:$16 sps:$4 sm:$0xff]   ;;  %v3866_v43 = vld [vmem:[#allocation5 + $0x1e8] ss:$16 sps:$4 sm:$0xff]   ;;  %v3875_v44 = vld [vmem:[#allocation5 + $0x1c0] ss:$16 sps:$4 sm:$0xff]   ;;  %v120_v15 = vlaneseq }
  0x5f   :  { %650 = vmatprep.subr.bf16.mxu0 %v3832_v16  ;;  %v3874_v45 = vld [vmem:[#allocation5 + $0x1cc] ss:$16 sps:$4 sm:$0xff]   ;;  %v3876_v46 = vld [vmem:[#allocation5 + $0x1a4] ss:$16 sps:$4 sm:$0xff]   ;;  %v3872_v47 = vld [vmem:[#allocation5 + $0x1c8] ss:$16 sps:$4 sm:$0xff]  }
  0x60   :  { %612 = vmatpush1.bf16.msra.mxu1 %v3839_v21  ;;  %v3881_v48 = vld [vmem:[#allocation5 + $0x1a0] ss:$16 sps:$4 sm:$0xff]   ;;  %v3880_v49 = vld [vmem:[#allocation5 + $0x1ac] ss:$16 sps:$4 sm:$0xff]   ;;  %v3882_v50 = vld [vmem:[#allocation5 + $0x184] ss:$16 sps:$4 sm:$0xff]  }
  0x61   :  { %613 = vmatprep.subr.bf16.mxu1 %v3840_v22  ;;  %v3878_v51 = vld [vmem:[#allocation5 + $0x1a8] ss:$16 sps:$4 sm:$0xff]   ;;  %v3887_v52 = vld [vmem:[#allocation5 + $0x180] ss:$16 sps:$4 sm:$0xff]   ;;  %v3886_v53 = vld [vmem:[#allocation5 + $0x18c] ss:$16 sps:$4 sm:$0xff]  }
  0x62   :  { %651 = vmatpush1.bf16.msra.mxu0 %v3830_v19  ;;  %v3888_v54 = vld [vmem:[#allocation5 + $0x164] ss:$16 sps:$4 sm:$0xff]   ;;  %v3884_v55 = vld [vmem:[#allocation5 + $0x188] ss:$16 sps:$4 sm:$0xff]   ;;  %v3893_v56 = vld [vmem:[#allocation5 + $0x160] ss:$16 sps:$4 sm:$0xff]  }
  0x63   :  { %652 = vmatprep.subr.bf16.mxu0 %v3838_v20  ;;  %v3892_v57 = vld [vmem:[#allocation5 + $0x16c] ss:$16 sps:$4 sm:$0xff]   ;;  %v3894_v58 = vld [vmem:[#allocation5 + $0x144] ss:$16 sps:$4 sm:$0xff]   ;;  %v3890_v59 = vld [vmem:[#allocation5 + $0x168] ss:$16 sps:$4 sm:$0xff]  }
  0x64   :  { %614 = vmatpush1.bf16.msra.mxu1 %v3845_v25  ;;  %v3899_v60 = vld [vmem:[#allocation5 + $0x140] ss:$16 sps:$4 sm:$0xff]   ;;  %v3898_v61 = vld [vmem:[#allocation5 + $0x14c] ss:$16 sps:$4 sm:$0xff]   ;;  %v3896_v62 = vld [vmem:[#allocation5 + $0x148] ss:$16 sps:$4 sm:$0xff]  }
  0x65   :  { %615 = vmatprep.subr.bf16.mxu1 %v3846_v26  ;;  %v3900_v63 = vld [vmem:[#allocation5 + $0x124] ss:$16 sps:$4 sm:$0xff]   ;;  %v3904_v0 = vld [vmem:[#allocation5 + $0x12c] ss:$16 sps:$4 sm:$0xff]   ;;  %v3902_v1 = vld [vmem:[#allocation5 + $0x128] ss:$16 sps:$4 sm:$0xff]  }
  0x66   :  { %653 = vmatpush1.bf16.msra.mxu0 %v3836_v23  ;;  %v3905_v2 = vld [vmem:[#allocation5 + $0x120] ss:$16 sps:$4 sm:$0xff]   ;;  %v3906_v3 = vld [vmem:[#allocation5 + $0x104] ss:$16 sps:$4 sm:$0xff]   ;;  %v3910_v4 = vld [vmem:[#allocation5 + $0x10c] ss:$16 sps:$4 sm:$0xff]  }
  0x67   :  { %654 = vmatprep.subr.bf16.mxu0 %v3844_v24  ;;  %v3908_v5 = vld [vmem:[#allocation5 + $0x108] ss:$16 sps:$4 sm:$0xff]   ;;  %v3911_v6 = vld [vmem:[#allocation5 + $0x100] ss:$16 sps:$4 sm:$0xff]   ;;  %v4215_v16 = vshrl.u32 %v120_v15, 7 }
  0x68   :  { %616 = vmatpush1.bf16.msra.mxu1 %v3851_v29  ;;  %v751_v7 = vld [vmem:[#allocation7 + $0x1c0] sm:$0xff] }
  0x69   :  { %617 = vmatprep.subr.bf16.mxu1 %v3852_v30  ;;  %v755_v8 = vld [vmem:[#allocation7 + $0x1e0] sm:$0xff]  ;;  %v4218_v17 = vsub.s32 0, %v4215_v16  ;;  %v4224_v19 = vsub.s32 1, %v4215_v16 }
  0x6a   :  { %655 = vmatpush1.bf16.msra.mxu0 %v3842_v27  ;;  %v879_v9 = vld [vmem:[#allocation7 + $0x5c0] sm:$0xff]  ;;  %v3441_v10 = vcombine.low %v751_v7, %v755_v8  ;;  %v3442_v11 = vcombine.high %v751_v7, %v755_v8 }
  0x6b   :  { %656 = vmatprep.subr.bf16.mxu0 %v3850_v28  ;;  %v883_v12 = vld [vmem:[#allocation7 + $0x5e0] sm:$0xff] }
  0x6c   :  { %618 = vmatpush1.bf16.msra.mxu1 %v3857_v33  ;;  %v3569_v13 = vcombine.low %v879_v9, %v883_v12  ;;  %v3570_v14 = vcombine.high %v879_v9, %v883_v12  ;;  %v118_v18 = vld [vmem:[%s4288_s2] sm:$0x3] }
  0x6d   :  { %619 = vmatprep.subr.bf16.mxu1 %v3858_v34  ;;  %v123_v20 = vrot.slane %v118_v18, %v4218_v17  ;;  %v127_v21 = vrot.slane %v118_v18, %v4224_v19  ;;  %v743_v28 = vld [vmem:[#allocation7 + $0x180] sm:$0xff] }
  0x6e   :  { %657 = vmatpush1.bf16.msra.mxu0 %v3848_v31  ;;  %v747_v30 = vld [vmem:[#allocation7 + $0x1a0] sm:$0xff] }
  0x6f   :  { %658 = vmatprep.subr.bf16.mxu0 %v3856_v32  ;;  %v871_v31 = vld [vmem:[#allocation7 + $0x580] sm:$0xff] }
  0x70   :  { %620 = vmatpush1.bf16.msra.mxu1 %v3863_v37  ;;  %v875_v32 = vld [vmem:[#allocation7 + $0x5a0] sm:$0xff] }
  0x71   :  { %621 = vmatprep.subr.bf16.mxu1 %v3864_v38  ;;  %v3562_v37 = vcombine.high %v871_v31, %v875_v32  ;;  %v735_v38 = vld [vmem:[#allocation7 + $0x140] sm:$0xff] }
  0x72   :  { %659 = vmatpush1.bf16.msra.mxu0 %v3854_v35  ;;  %v707_v7 = vld [vmem:[#allocation7 + $0x60] sm:$0xff] }
  0x73   :  { %660 = vmatprep.subr.bf16.mxu0 %v3862_v36  ;;  %v3434_v36 = vcombine.high %v743_v28, %v747_v30  ;;  %v831_v8 = vld [vmem:[#allocation7 + $0x440] sm:$0xff] }
  0x74   :  { %622 = vmatpush2.bf16.msra.mxu1 %v3869_v41  ;;  %v867_v41 = vld [vmem:[#allocation7 + $0x560] sm:$0xff] }
  0x75   :  { %623 = vmatprep.subr.bf16.mxu1 %v3870_v42  ;;  %v3433_v42 = vcombine.low %v743_v28, %v747_v30  ;;  %v835_v9 = vld [vmem:[#allocation7 + $0x460] sm:$0xff] }
  0x76   :  { %661 = vmatpush1.bf16.msra.mxu0 %v3860_v39  ;;  %v739_v39 = vld [vmem:[#allocation7 + $0x160] sm:$0xff] }
  0x77   :  { %662 = vmatprep.subr.bf16.mxu0 %v3868_v40  ;;  %v863_v40 = vld [vmem:[#allocation7 + $0x540] sm:$0xff] }
  0x78   :  { %624 = vmatpush2.bf16.msra.mxu1 %v3875_v44  ;;  %v3426_v44 = vcombine.high %v735_v38, %v739_v39  ;;  %v699_v15 = vld [vmem:[#allocation7 + $0x20] sm:$0xff] }
  0x79   :  { %625 = vmatprep.subr.bf16.mxu1 %v3876_v46  ;;  %v727_v46 = vld [vmem:[#allocation7 + $0x100] sm:$0xff] }
  0x7a   :  { %663 = vmatpush2.bf16.msra.mxu0 %v3866_v43  ;;  %v3561_v43 = vcombine.low %v871_v31, %v875_v32  ;;  %v823_v18 = vld [vmem:[#allocation7 + $0x400] sm:$0xff] }
  0x7b   :  { %664 = vmatprep.subr.bf16.mxu0 %v3874_v45  ;;  %v3554_v45 = vcombine.high %v863_v40, %v867_v41  ;;  %v947_v28 = vld [vmem:[#allocation7 + $0x7e0] sm:$0xff] }
  0x7c   :  { %626 = vmatpush2.bf16.msra.mxu1 %v3881_v48  ;;  %v855_v48 = vld [vmem:[#allocation7 + $0x500] sm:$0xff] }
  0x7d   :  { %627 = vmatprep.subr.bf16.mxu1 %v3882_v50  ;;  %v3425_v50 = vcombine.low %v735_v38, %v739_v39 }
  0x7e   :  { %665 = vmatpush2.bf16.msra.mxu0 %v3872_v47  ;;  %v731_v47 = vld [vmem:[#allocation7 + $0x120] sm:$0xff] }
  0x7f   :  { %666 = vmatprep.subr.bf16.mxu0 %v3880_v49  ;;  %v859_v49 = vld [vmem:[#allocation7 + $0x520] sm:$0xff] }
  0x80   :  { %628 = vmatpush2.bf16.msra.mxu1 %v3887_v52  ;;  %v3418_v52 = vcombine.high %v727_v46, %v731_v47 }
  0x81   :  { %629 = vmatprep.subr.bf16.mxu1 %v3888_v54  ;;  %v719_v54 = vld [vmem:[#allocation7 + $0xc0] sm:$0xff] }
  0x82   :  { %667 = vmatpush2.bf16.msra.mxu0 %v3878_v51  ;;  %v3553_v51 = vcombine.low %v863_v40, %v867_v41  ;;  %v799_v41 = vld [vmem:[#allocation7 + $0x340] sm:$0xff] }
  0x83   :  { %668 = vmatprep.subr.bf16.mxu0 %v3886_v53  ;;  %v3546_v53 = vcombine.high %v855_v48, %v859_v49 }
  0x84   :  { %630 = vmatpush2.bf16.msra.mxu1 %v3893_v56  ;;  %v847_v56 = vld [vmem:[#allocation7 + $0x4c0] sm:$0xff] }
  0x85   :  { %631 = vmatprep.subr.bf16.mxu1 %v3894_v58  ;;  %v3417_v58 = vcombine.low %v727_v46, %v731_v47 }
  0x86   :  { %669 = vmatpush2.bf16.msra.mxu0 %v3884_v55  ;;  %v723_v55 = vld [vmem:[#allocation7 + $0xe0] sm:$0xff] }
  0x87   :  { %670 = vmatprep.subr.bf16.mxu0 %v3892_v57  ;;  %v851_v57 = vld [vmem:[#allocation7 + $0x4e0] sm:$0xff] }
  0x88   :  { %632 = vmatpush2.bf16.msra.mxu1 %v3899_v60  ;;  %v3410_v60 = vcombine.high %v719_v54, %v723_v55 }
  0x89   :  { %633 = vmatprep.subr.bf16.mxu1 %v3900_v63  ;;  %v715_v63 = vld [vmem:[#allocation7 + $0xa0] sm:$0xff] }
  0x8a   :  { %671 = vmatpush2.bf16.msra.mxu0 %v3890_v59  ;;  %v3545_v59 = vcombine.low %v855_v48, %v859_v49  ;;  %v791_v49 = vld [vmem:[#allocation7 + $0x300] sm:$0xff] }
  0x8b   :  { %672 = vmatprep.subr.bf16.mxu0 %v3898_v61  ;;  %v3538_v61 = vcombine.high %v847_v56, %v851_v57 }
  0x8c   :  { %634 = vmatpush2.bf16.msra.mxu1 %v3905_v2  ;;  %v3409_v2 = vcombine.low %v719_v54, %v723_v55 }
  0x8d   :  { %635 = vmatprep.subr.bf16.mxu1 %v3906_v3  ;;  %v3537_v3 = vcombine.low %v847_v56, %v851_v57  ;;  %v783_v57 = vld [vmem:[#allocation7 + $0x2c0] sm:$0xff] }
  0x8e   :  { %673 = vmatpush2.bf16.msra.mxu0 %v3896_v62  ;;  %v711_v62 = vld [vmem:[#allocation7 + $0x80] sm:$0xff] }
  0x8f   :  { %674 = vmatprep.subr.bf16.mxu0 %v3904_v0  ;;  %v839_v0 = vld [vmem:[#allocation7 + $0x480] sm:$0xff] }
  0x90   :  { %636 = vmatpush2.bf16.msra.mxu1 %v3911_v6  ;;  %v703_v6 = vld [vmem:[#allocation7 + $0x40] sm:$0xff] }
  0x91   :  { %2273 = vmatprep.subr.bf16.mxu1 %v3442_v11  ;;  %v3394_v12 = vcombine.high %v703_v6, %v707_v7 }
  0x92   :  { %675 = vmatpush2.bf16.msra.mxu0 %v3902_v1  ;;  %v843_v1 = vld [vmem:[#allocation7 + $0x4a0] sm:$0xff] }
  0x93   :  { %676 = vmatprep.subr.bf16.mxu0 %v3910_v4  ;;  %v3402_v4 = vcombine.high %v711_v62, %v715_v63  ;;  %v3529_v11 = vcombine.low %v839_v0, %v843_v1 }
  0x96   :  { %677 = vmatpush2.bf16.msra.mxu0 %v3908_v5  ;;  %v3530_v5 = vcombine.high %v839_v0, %v843_v1  ;;  %v775_v1 = vld [vmem:[#allocation7 + $0x280] sm:$0xff] }
  0x97   :  { %2314 = vmatprep.subr.bf16.mxu0 %v3570_v14  ;;  %v695_v14 = vld [vmem:[#allocation7] sm:$0xff] }
 0x119   :  { %v188_v22 = vpop.f32.mrf.mxu0 }
 0x11a   :  { %v189_v23 = vadd.f32 %v188_v22, %v123_v20  ;;  %v827_v20 = vld [vmem:[#allocation7 + $0x420] sm:$0xff]  ;;  %v3521_v22 = vcombine.low %v831_v8, %v835_v9 }
 0x11b   :  { %v190_v24 = vpop.f32.mrf.mxu0  ;;  %v3513_v30 = vcombine.low %v823_v18, %v827_v20 }
 0x11c   :  { %v191_v25 = vadd.f32 %v190_v24, %v127_v21  ;;  %v195_v26 = vmax.f32 %v189_v23, 0.0  ;;  %v3393_v21 = vcombine.low %v703_v6, %v707_v7  ;;  %v3386_v23 = vcombine.high %v695_v14, %v699_v15 }
 0x11d   :  { %v192_v27 = vpop.f32.mrf.mxu0  ;;  %v3514_v24 = vcombine.high %v823_v18, %v827_v20 }
 0x11e   :  { %v196_v29 = vmax.f32 %v191_v25, 0.0  ;;  %v197_v35 = vpack.c.bf16 %v195_v26, %v195_v26  ;;  %v815_v25 = vld [vmem:[#allocation7 + $0x3c0] sm:$0xff] }
 0x11f   :  { %v193_v33 = vpop.f32.mrf.mxu0  ;;  %v819_v26 = vld [vmem:[#allocation7 + $0x3e0] sm:$0xff] }
 0x120   :  { %v198_v34 = vpack.c.bf16 %v196_v29, %v196_v29  ;;  %v943_v27 = vld [vmem:[#allocation7 + $0x7c0] sm:$0xff]  ;;  %v3385_v29 = vcombine.low %v695_v14, %v699_v15  ;;  %v3506_v31 = vcombine.high %v815_v25, %v819_v26 }
 0x121   :  { %v3634_v32 = vcombine.high %v943_v27, %v947_v28  ;;  %v807_v33 = vld [vmem:[#allocation7 + $0x380] sm:$0xff]  ;;  %v3633_v38 = vcombine.low %v943_v27, %v947_v28 }
 0x122   :  { %637 = vmatprep.mubr.bf16.mxu1 %v198_v34  ;;  %678 = vmatprep.mubr.bf16.mxu0 %v198_v34  ;;  %v811_v34 = vld [vmem:[#allocation7 + $0x3a0] sm:$0xff] }
 0x123   :  { %638 = vmatmul.mubr.bf16.vlgmr.msra.gmra.mxu1 %v197_v35  ;;  %679 = vmatmul.mubr.bf16.vlgmr.msra.gmra.mxu0 %v197_v35  ;;  %v935_v35 = vld [vmem:[#allocation7 + $0x780] sm:$0xff]  ;;  %v3498_v39 = vcombine.high %v807_v33, %v811_v34 }
 0x124   :  { %2274 = vmatpush1.bf16.msra.mxu1 %v3441_v10  ;;  %2315 = vmatpush1.bf16.msra.mxu0 %v3569_v13  ;;  %v3401_v10 = vcombine.low %v711_v62, %v715_v63  ;;  %v3522_v13 = vcombine.high %v831_v8, %v835_v9  ;;  %v899_v15 = vld [vmem:[#allocation7 + $0x660] sm:$0xff] }
 0x125   :  { %2275 = vmatprep.subr.bf16.mxu1 %v3434_v36  ;;  %2316 = vmatprep.subr.bf16.mxu0 %v3562_v37  ;;  %v939_v36 = vld [vmem:[#allocation7 + $0x7a0] sm:$0xff]  ;;  %v3505_v37 = vcombine.low %v815_v25, %v819_v26 }
 0x126   :  { %v3626_v40 = vcombine.high %v935_v35, %v939_v36  ;;  %v3625_v46 = vcombine.low %v935_v35, %v939_v36  ;;  %v891_v26 = vld [vmem:[#allocation7 + $0x620] sm:$0xff] }
 0x128   :  { %2276 = vmatpush1.bf16.msra.mxu1 %v3433_v42  ;;  %2317 = vmatpush1.bf16.msra.mxu0 %v3561_v43  ;;  %v803_v42 = vld [vmem:[#allocation7 + $0x360] sm:$0xff] }
 0x129   :  { %2277 = vmatprep.subr.bf16.mxu1 %v3426_v44  ;;  %2318 = vmatprep.subr.bf16.mxu0 %v3554_v45  ;;  %v927_v43 = vld [vmem:[#allocation7 + $0x740] sm:$0xff]  ;;  %v3497_v45 = vcombine.low %v807_v33, %v811_v34  ;;  %v3490_v47 = vcombine.high %v799_v41, %v803_v42  ;;  %v884_v34 = vld [vmem:[#allocation7 + $0x5e8] sm:$0xff] }
 0x12a   :  { %v931_v44 = vld [vmem:[#allocation7 + $0x760] sm:$0xff] }
 0x12b   :  { %v3618_v48 = vcombine.high %v927_v43, %v931_v44  ;;  %v3617_v54 = vcombine.low %v927_v43, %v931_v44 }
 0x12c   :  { %2278 = vmatpush1.bf16.msra.mxu1 %v3425_v50  ;;  %2319 = vmatpush1.bf16.msra.mxu0 %v3553_v51  ;;  %v795_v50 = vld [vmem:[#allocation7 + $0x320] sm:$0xff] }
 0x12d   :  { %2279 = vmatprep.subr.bf16.mxu1 %v3418_v52  ;;  %2320 = vmatprep.subr.bf16.mxu0 %v3546_v53  ;;  %v919_v51 = vld [vmem:[#allocation7 + $0x700] sm:$0xff]  ;;  %v3489_v53 = vcombine.low %v799_v41, %v803_v42  ;;  %v3482_v55 = vcombine.high %v791_v49, %v795_v50 }
 0x12e   :  { %v923_v52 = vld [vmem:[#allocation7 + $0x720] sm:$0xff] }
 0x12f   :  { %v3610_v56 = vcombine.high %v919_v51, %v923_v52  ;;  %v3609_v62 = vcombine.low %v919_v51, %v923_v52 }
 0x130   :  { %2280 = vmatpush1.bf16.msra.mxu1 %v3417_v58  ;;  %2321 = vmatpush1.bf16.msra.mxu0 %v3545_v59  ;;  %v787_v58 = vld [vmem:[#allocation7 + $0x2e0] sm:$0xff] }
 0x131   :  { %2281 = vmatprep.subr.bf16.mxu1 %v3410_v60  ;;  %2322 = vmatprep.subr.bf16.mxu0 %v3538_v61  ;;  %v911_v59 = vld [vmem:[#allocation7 + $0x6c0] sm:$0xff]  ;;  %v3481_v61 = vcombine.low %v791_v49, %v795_v50  ;;  %v3474_v63 = vcombine.high %v783_v57, %v787_v58 }
 0x132   :  { %v915_v60 = vld [vmem:[#allocation7 + $0x6e0] sm:$0xff] }
 0x133   :  { %v3602_v0 = vcombine.high %v911_v59, %v915_v60  ;;  %v3601_v6 = vcombine.low %v911_v59, %v915_v60  ;;  %v744_v59 = vld [vmem:[#allocation7 + $0x188] sm:$0xff] }
 0x134   :  { %2282 = vmatpush1.bf16.msra.mxu1 %v3409_v2  ;;  %2323 = vmatpush1.bf16.msra.mxu0 %v3537_v3  ;;  %v779_v2 = vld [vmem:[#allocation7 + $0x2a0] sm:$0xff] }
 0x135   :  { %2283 = vmatprep.subr.bf16.mxu1 %v3402_v4  ;;  %2324 = vmatprep.subr.bf16.mxu0 %v3530_v5  ;;  %v903_v3 = vld [vmem:[#allocation7 + $0x680] sm:$0xff]  ;;  %v3473_v5 = vcombine.low %v783_v57, %v787_v58  ;;  %v3466_v7 = vcombine.high %v775_v1, %v779_v2  ;;  %v3465_v9 = vcombine.low %v775_v1, %v779_v2 }
 0x136   :  { %v907_v4 = vld [vmem:[#allocation7 + $0x6a0] sm:$0xff] }
 0x137   :  { %v3594_v8 = vcombine.high %v903_v3, %v907_v4 }
 0x138   :  { %2284 = vmatpush1.bf16.msra.mxu1 %v3401_v10  ;;  %2325 = vmatpush1.bf16.msra.mxu0 %v3529_v11  ;;  %v3593_v10 = vcombine.low %v903_v3, %v907_v4  ;;  %v767_v11 = vld [vmem:[#allocation7 + $0x240] sm:$0xff] }
 0x139   :  { %2285 = vmatprep.subr.bf16.mxu1 %v3394_v12  ;;  %2326 = vmatprep.subr.bf16.mxu0 %v3522_v13  ;;  %v771_v12 = vld [vmem:[#allocation7 + $0x260] sm:$0xff] }
 0x13a   :  { %v895_v13 = vld [vmem:[#allocation7 + $0x640] sm:$0xff]  ;;  %v3458_v14 = vcombine.high %v767_v11, %v771_v12  ;;  %v3457_v18 = vcombine.low %v767_v11, %v771_v12 }
 0x13b   :  { %v3585_v20 = vcombine.low %v895_v13, %v899_v15 }
 0x13c   :  { %2286 = vmatpush1.bf16.msra.mxu1 %v3393_v21  ;;  %2327 = vmatpush1.bf16.msra.mxu0 %v3521_v22  ;;  %v3586_v21 = vcombine.high %v895_v13, %v899_v15  ;;  %v759_v22 = vld [vmem:[#allocation7 + $0x200] sm:$0xff]  ;;  %v728_v15 = vld [vmem:[#allocation7 + $0x108] sm:$0xff] }
 0x13d   :  { %2287 = vmatprep.subr.bf16.mxu1 %v3386_v23  ;;  %2328 = vmatprep.subr.bf16.mxu0 %v3514_v24  ;;  %v763_v23 = vld [vmem:[#allocation7 + $0x220] sm:$0xff] }
 0x13e   :  { %v887_v24 = vld [vmem:[#allocation7 + $0x600] sm:$0xff]  ;;  %v3450_v25 = vcombine.high %v759_v22, %v763_v23  ;;  %v3449_v27 = vcombine.low %v759_v22, %v763_v23 }
 0x13f   :  { %v3577_v28 = vcombine.low %v887_v24, %v891_v26 }
 0x140   :  { %2288 = vmatpush1.bf16.msra.mxu1 %v3385_v29  ;;  %2329 = vmatpush1.bf16.msra.mxu0 %v3513_v30  ;;  %v3578_v29 = vcombine.high %v887_v24, %v891_v26  ;;  %v752_v30 = vld [vmem:[#allocation7 + $0x1c8] sm:$0xff] }
 0x141   :  { %2289 = vmatprep.subr.bf16.mxu1 %v3506_v31  ;;  %2330 = vmatprep.subr.bf16.mxu0 %v3634_v32  ;;  %v756_v31 = vld [vmem:[#allocation7 + $0x1e8] sm:$0xff] }
 0x142   :  { %v880_v32 = vld [vmem:[#allocation7 + $0x5c8] sm:$0xff]  ;;  %v3444_v33 = vcombine.high %v752_v30, %v756_v31  ;;  %v3443_v35 = vcombine.low %v752_v30, %v756_v31 }
 0x143   :  { %v3571_v36 = vcombine.low %v880_v32, %v884_v34  ;;  %v720_v26 = vld [vmem:[#allocation7 + $0xc8] sm:$0xff] }
 0x144   :  { %2290 = vmatpush2.bf16.msra.mxu1 %v3505_v37  ;;  %2331 = vmatpush2.bf16.msra.mxu0 %v3633_v38  ;;  %v3572_v37 = vcombine.high %v880_v32, %v884_v34  ;;  %v275_v38 = vsub.s32 2, %v4215_v16  ;;  %v712_v34 = vld [vmem:[#allocation7 + $0x88] sm:$0xff] }
 0x145   :  { %2291 = vmatprep.subr.bf16.mxu1 %v3498_v39  ;;  %2332 = vmatprep.subr.bf16.mxu0 %v3626_v40  ;;  %v263_v39 = vld [vmem:[%s4290_s4] sm:$0xf]  ;;  %v279_v40 = vsub.s32 3, %v4215_v16  ;;  %s4143_s4 = smov [#allocation13]  }
 0x146   :  { %v268_v41 = vrot.slane %v263_v39, %v4218_v17  ;;  %v276_v42 = vrot.slane %v263_v39, %v275_v38  ;;  %v272_v43 = vrot.slane %v263_v39, %v4224_v19  ;;  %s3304_s24 = sshll.u32 %s4143_s4, 4  ;;  %s3305_s24 = int_to_ptr.vmem [resolvable:$true] %s3304_s24 }
 0x147   :  { %v280_v44 = vrot.slane %v263_v39, %v279_v40  ;;  %s4098_s25 = scalar_lea.vmem %s3305_s24, 128  ;;  %p4103_p3 = scmp.lt.s32.totalorder %s3305_s24, %s3305_s24 }
 0x148   :  { %2292 = vmatpush2.bf16.msra.mxu1 %v3497_v45  ;;  %2333 = vmatpush2.bf16.msra.mxu0 %v3625_v46  ;;  %p4099_p2 = scmp.ne.s32.totalorder %s3305_s24, %s4098_s25  ;;  %p4104_p4 = scmp.lt.s32.totalorder %s4098_s25, %s4098_s25 }
 0x149   :  { %2293 = vmatprep.subr.bf16.mxu1 %v3490_v47  ;;  %2334 = vmatprep.subr.bf16.mxu0 %v3618_v48 }
 0x14a   :  { %p4105_p5 = por %p4104_p4, %p4103_p3 }
 0x14c   :  { %2294 = vmatpush2.bf16.msra.mxu1 %v3489_v53  ;;  %2335 = vmatpush2.bf16.msra.mxu0 %v3617_v54  ;;  %p4106_p6 = pnand %p4105_p5, %p4099_p2 }
 0x14d   :  { %2295 = vmatprep.subr.bf16.mxu1 %v3482_v55  ;;  %2336 = vmatprep.subr.bf16.mxu0 %v3610_v56 }
 0x150   :  { %2296 = vmatpush2.bf16.msra.mxu1 %v3481_v61  ;;  %2337 = vmatpush2.bf16.msra.mxu0 %v3609_v62  ;;  %v748_v62 = vld [vmem:[#allocation7 + $0x1a8] sm:$0xff] }
 0x151   :  { %2297 = vmatprep.subr.bf16.mxu1 %v3474_v63  ;;  %2338 = vmatprep.subr.bf16.mxu0 %v3602_v0  ;;  %v872_v63 = vld [vmem:[#allocation7 + $0x588] sm:$0xff]  ;;  %v3435_v11 = vcombine.low %v744_v59, %v748_v62 }
 0x152   :  { %v876_v0 = vld [vmem:[#allocation7 + $0x5a8] sm:$0xff] }
 0x153   :  { %v3563_v12 = vcombine.low %v872_v63, %v876_v0 }
 0x154   :  { %2298 = vmatpush2.bf16.msra.mxu1 %v3473_v5  ;;  %2339 = vmatpush2.bf16.msra.mxu0 %v3601_v6  ;;  %v736_v5 = vld [vmem:[#allocation7 + $0x148] sm:$0xff]  ;;  %v3436_v6 = vcombine.high %v744_v59, %v748_v62 }
 0x155   :  { %2299 = vmatprep.subr.bf16.mxu1 %v3466_v7  ;;  %2340 = vmatprep.subr.bf16.mxu0 %v3594_v8  ;;  %v3564_v7 = vcombine.high %v872_v63, %v876_v0  ;;  %v740_v8 = vld [vmem:[#allocation7 + $0x168] sm:$0xff] }
 0x156   :  { %v3428_v13 = vcombine.high %v736_v5, %v740_v8  ;;  %v3427_v22 = vcombine.low %v736_v5, %v740_v8  ;;  %v944_v62 = vld [vmem:[#allocation7 + $0x7c8] sm:$0xff] }
 0x157   :  { %v948_v63 = vld [vmem:[#allocation7 + $0x7e8] sm:$0xff] }
 0x158   :  { %2300 = vmatpush2.bf16.msra.mxu1 %v3465_v9  ;;  %2341 = vmatpush2.bf16.msra.mxu0 %v3593_v10  ;;  %v864_v9 = vld [vmem:[#allocation7 + $0x548] sm:$0xff] }
 0x159   :  { %2301 = vmatprep.subr.bf16.mxu1 %v3458_v14  ;;  %2342 = vmatprep.subr.bf16.mxu0 %v3586_v21  ;;  %v868_v10 = vld [vmem:[#allocation7 + $0x568] sm:$0xff] }
 0x15a   :  { %v3556_v14 = vcombine.high %v864_v9, %v868_v10  ;;  %v860_v21 = vld [vmem:[#allocation7 + $0x528] sm:$0xff]  ;;  %v3555_v23 = vcombine.low %v864_v9, %v868_v10 }
 0x15b   :  { %v808_v8 = vld [vmem:[#allocation7 + $0x388] sm:$0xff] }
 0x15c   :  { %2302 = vmatpush2.bf16.msra.mxu1 %v3457_v18  ;;  %2343 = vmatpush2.bf16.msra.mxu0 %v3585_v20  ;;  %v732_v18 = vld [vmem:[#allocation7 + $0x128] sm:$0xff] }
 0x15d   :  { %2303 = vmatprep.subr.bf16.mxu1 %v3450_v25  ;;  %2344 = vmatprep.subr.bf16.mxu0 %v3578_v29  ;;  %v856_v20 = vld [vmem:[#allocation7 + $0x508] sm:$0xff]  ;;  %v3420_v24 = vcombine.high %v728_v15, %v732_v18  ;;  %v3419_v30 = vcombine.low %v728_v15, %v732_v18 }
 0x15e   :  { %v3548_v25 = vcombine.high %v856_v20, %v860_v21  ;;  %v852_v29 = vld [vmem:[#allocation7 + $0x4e8] sm:$0xff]  ;;  %v3547_v31 = vcombine.low %v856_v20, %v860_v21 }
 0x15f   :  { %v812_v9 = vld [vmem:[#allocation7 + $0x3a8] sm:$0xff] }
 0x160   :  { %2304 = vmatpush2.bf16.msra.mxu1 %v3449_v27  ;;  %2345 = vmatpush2.bf16.msra.mxu0 %v3577_v28  ;;  %v724_v27 = vld [vmem:[#allocation7 + $0xe8] sm:$0xff] }
 0x161   :  { %2355 = vmatprep.subr.bf16.mxu1 %v3444_v33  ;;  %2396 = vmatprep.subr.bf16.mxu0 %v3572_v37  ;;  %v848_v28 = vld [vmem:[#allocation7 + $0x4c8] sm:$0xff]  ;;  %v3412_v32 = vcombine.high %v720_v26, %v724_v27  ;;  %v3411_v39 = vcombine.low %v720_v26, %v724_v27 }
 0x162   :  { %v3540_v33 = vcombine.high %v848_v28, %v852_v29  ;;  %v844_v37 = vld [vmem:[#allocation7 + $0x4a8] sm:$0xff] }
 0x163   :  { %v936_v10 = vld [vmem:[#allocation7 + $0x788] sm:$0xff] }
 0x164   :  { %v800_v18 = vld [vmem:[#allocation7 + $0x348] sm:$0xff] }
 0x165   :  { %v804_v20 = vld [vmem:[#allocation7 + $0x368] sm:$0xff] }
 0x166   :  { %v928_v21 = vld [vmem:[#allocation7 + $0x748] sm:$0xff] }
 0x167   :  { %v792_v27 = vld [vmem:[#allocation7 + $0x308] sm:$0xff] }
 0x1e3   :  { %v639_v45 = vpop.f32.mrf.mxu1  ;;  %v680_v46 = vpop.f32.mrf.mxu0 }
 0x1e4   :  { %v640_v47 = vadd.f32 %v639_v45, %v268_v41  ;;  %v681_v48 = vadd.f32 %v680_v46, %v276_v42  ;;  %v3539_v41 = vcombine.low %v848_v28, %v852_v29  ;;  %v708_v45 = vld [vmem:[#allocation7 + $0x68] sm:$0xff] }
 0x1e5   :  { %v641_v49 = vpop.f32.mrf.mxu1  ;;  %v682_v50 = vpop.f32.mrf.mxu0  ;;  %v832_v46 = vld [vmem:[#allocation7 + $0x448] sm:$0xff] }
 0x1e6   :  { %v642_v51 = vadd.f32 %v641_v49, %v272_v43  ;;  %v683_v52 = vadd.f32 %v682_v50, %v280_v44  ;;  %v687_v53 = vmax.f32 %v640_v47, 0.0  ;;  %v689_v54 = vmax.f32 %v681_v48, 0.0  ;;  %v704_v44 = vld [vmem:[#allocation7 + $0x48] sm:$0xff] }
 0x1e7   :  { %v643_v55 = vpop.f32.mrf.mxu1  ;;  %v684_v56 = vpop.f32.mrf.mxu0  ;;  %v836_v47 = vld [vmem:[#allocation7 + $0x468] sm:$0xff]  ;;  %v3396_v50 = vcombine.high %v704_v44, %v708_v45 }
 0x1e8   :  { %v688_v57 = vmax.f32 %v642_v51, 0.0  ;;  %v690_v58 = vmax.f32 %v683_v52, 0.0  ;;  %v4243_v3 = vpack.c.bf16 %v687_v53, %v687_v53  ;;  %v4245_v4 = vpack.c.bf16 %v689_v54, %v689_v54  ;;  %v696_v52 = vld [vmem:[#allocation7 + $0x8] sm:$0xff] }
 0x1e9   :  { %v644_v60 = vpop.f32.mrf.mxu1  ;;  %v685_v61 = vpop.f32.mrf.mxu0  ;;  %v3524_v51 = vcombine.high %v832_v46, %v836_v47  ;;  %v700_v53 = vld [vmem:[#allocation7 + $0x28] sm:$0xff]  ;;  %v3395_v56 = vcombine.low %v704_v44, %v708_v45 }
 0x1ea   :  { %v4239_v1 = vpack.c.bf16 %v688_v57, %v688_v57  ;;  %v4241_v2 = vpack.c.bf16 %v690_v58, %v690_v58  ;;  %v824_v54 = vld [vmem:[#allocation7 + $0x408] sm:$0xff]  ;;  %v3523_v57 = vcombine.low %v832_v46, %v836_v47  ;;  %v3388_v58 = vcombine.high %v696_v52, %v700_v53 }
 0x1eb   :  { %v828_v55 = vld [vmem:[#allocation7 + $0x428] sm:$0xff]  ;;  %v3387_v0 = vcombine.low %v696_v52, %v700_v53 }
 0x1ec   :  { %2305 = vmatprep.mubr.bf16.mxu1 %v4239_v1  ;;  %2346 = vmatprep.mubr.bf16.mxu0 %v4241_v2  ;;  %v3516_v59 = vcombine.high %v824_v54, %v828_v55  ;;  %v816_v60 = vld [vmem:[#allocation7 + $0x3c8] sm:$0xff]  ;;  %v3515_v5 = vcombine.low %v824_v54, %v828_v55 }
 0x1ed   :  { %2306 = vmatmul.mubr.bf16.vlgmr.msra.gmra.mxu1 %v4243_v3  ;;  %2347 = vmatmul.mubr.bf16.vlgmr.msra.gmra.mxu0 %v4245_v4  ;;  %v820_v61 = vld [vmem:[#allocation7 + $0x3e8] sm:$0xff] }
 0x1ee   :  { %2356 = vmatpush1.bf16.msra.mxu1 %v3443_v35  ;;  %2397 = vmatpush1.bf16.msra.mxu0 %v3571_v36  ;;  %v716_v35 = vld [vmem:[#allocation7 + $0xa8] sm:$0xff] }
 0x1ef   :  { %2387 = vmatprep.mubr.bf16.mxu1 %v4239_v1  ;;  %2428 = vmatprep.mubr.bf16.mxu0 %v4241_v2  ;;  %v840_v36 = vld [vmem:[#allocation7 + $0x488] sm:$0xff]  ;;  %v3404_v42 = vcombine.high %v712_v34, %v716_v35  ;;  %v3403_v48 = vcombine.low %v712_v34, %v716_v35 }
 0x1f0   :  { %2357 = vmatprep.subr.bf16.mxu1 %v3436_v6  ;;  %2398 = vmatprep.subr.bf16.mxu0 %v3564_v7  ;;  %v3532_v43 = vcombine.high %v840_v36, %v844_v37  ;;  %v3531_v49 = vcombine.low %v840_v36, %v844_v37  ;;  %v3508_v6 = vcombine.high %v816_v60, %v820_v61  ;;  %v796_v28 = vld [vmem:[#allocation7 + $0x328] sm:$0xff] }
 0x1f1   :  { %v3636_v7 = vcombine.high %v944_v62, %v948_v63  ;;  %v920_v29 = vld [vmem:[#allocation7 + $0x708] sm:$0xff] }
 0x1f2   :  { %2358 = vmatpush1.bf16.msra.mxu1 %v3435_v11  ;;  %2399 = vmatpush1.bf16.msra.mxu0 %v3563_v12  ;;  %v940_v11 = vld [vmem:[#allocation7 + $0x7a8] sm:$0xff]  ;;  %v3507_v12 = vcombine.low %v816_v60, %v820_v61 }
 0x1f3   :  { %2359 = vmatprep.subr.bf16.mxu1 %v3428_v13  ;;  %2400 = vmatprep.subr.bf16.mxu0 %v3556_v14  ;;  %v3635_v13 = vcombine.low %v944_v62, %v948_v63  ;;  %v3500_v14 = vcombine.high %v808_v8, %v812_v9  ;;  %v3628_v15 = vcombine.high %v936_v10, %v940_v11  ;;  %v784_v35 = vld [vmem:[#allocation7 + $0x2c8] sm:$0xff] }
 0x1f4   :  { %v788_v36 = vld [vmem:[#allocation7 + $0x2e8] sm:$0xff] }
 0x1f5   :  { %v912_v37 = vld [vmem:[#allocation7 + $0x6c8] sm:$0xff] }
 0x1f6   :  { %2360 = vmatpush1.bf16.msra.mxu1 %v3427_v22  ;;  %2401 = vmatpush1.bf16.msra.mxu0 %v3555_v23  ;;  %v932_v22 = vld [vmem:[#allocation7 + $0x768] sm:$0xff]  ;;  %v3499_v23 = vcombine.low %v808_v8, %v812_v9  ;;  %v753_v9 = vld [vmem:[#allocation7 + $0x1d0] sm:$0xff] }
 0x1f7   :  { %2361 = vmatprep.subr.bf16.mxu1 %v3420_v24  ;;  %2402 = vmatprep.subr.bf16.mxu0 %v3548_v25  ;;  %v3627_v24 = vcombine.low %v936_v10, %v940_v11  ;;  %v3492_v25 = vcombine.high %v800_v18, %v804_v20  ;;  %v3620_v26 = vcombine.high %v928_v21, %v932_v22  ;;  %v776_v45 = vld [vmem:[#allocation7 + $0x288] sm:$0xff]  ;;  %v757_v10 = vld [vmem:[#allocation7 + $0x1f0] sm:$0xff] }
 0x1f8   :  { %v780_v46 = vld [vmem:[#allocation7 + $0x2a8] sm:$0xff]  ;;  %v881_v11 = vld [vmem:[#allocation7 + $0x5d0] sm:$0xff] }
 0x1f9   :  { %v904_v47 = vld [vmem:[#allocation7 + $0x688] sm:$0xff] }
 0x1fa   :  { %2362 = vmatpush1.bf16.msra.mxu1 %v3419_v30  ;;  %2403 = vmatpush1.bf16.msra.mxu0 %v3547_v31  ;;  %v924_v30 = vld [vmem:[#allocation7 + $0x728] sm:$0xff]  ;;  %v3491_v31 = vcombine.low %v800_v18, %v804_v20  ;;  %v745_v20 = vld [vmem:[#allocation7 + $0x190] sm:$0xff] }
 0x1fb   :  { %2363 = vmatprep.subr.bf16.mxu1 %v3412_v32  ;;  %2404 = vmatprep.subr.bf16.mxu0 %v3540_v33  ;;  %v3619_v32 = vcombine.low %v928_v21, %v932_v22  ;;  %v3484_v33 = vcombine.high %v792_v27, %v796_v28  ;;  %v3612_v34 = vcombine.high %v920_v29, %v924_v30  ;;  %v768_v53 = vld [vmem:[#allocation7 + $0x248] sm:$0xff]  ;;  %v749_v21 = vld [vmem:[#allocation7 + $0x1b0] sm:$0xff] }
 0x1fc   :  { %v772_v54 = vld [vmem:[#allocation7 + $0x268] sm:$0xff]  ;;  %v873_v22 = vld [vmem:[#allocation7 + $0x590] sm:$0xff] }
 0x1fd   :  { %v896_v55 = vld [vmem:[#allocation7 + $0x648] sm:$0xff] }
 0x1fe   :  { %2364 = vmatpush1.bf16.msra.mxu1 %v3411_v39  ;;  %2405 = vmatpush1.bf16.msra.mxu0 %v3539_v41  ;;  %v916_v39 = vld [vmem:[#allocation7 + $0x6e8] sm:$0xff]  ;;  %v3483_v41 = vcombine.low %v792_v27, %v796_v28  ;;  %v737_v28 = vld [vmem:[#allocation7 + $0x150] sm:$0xff] }
 0x1ff   :  { %2365 = vmatprep.subr.bf16.mxu1 %v3404_v42  ;;  %2406 = vmatprep.subr.bf16.mxu0 %v3532_v43  ;;  %v3611_v42 = vcombine.low %v920_v29, %v924_v30  ;;  %v3476_v43 = vcombine.high %v784_v35, %v788_v36  ;;  %v3604_v44 = vcombine.high %v912_v37, %v916_v39  ;;  %v760_v61 = vld [vmem:[#allocation7 + $0x208] sm:$0xff]  ;;  %v741_v29 = vld [vmem:[#allocation7 + $0x170] sm:$0xff] }
 0x200   :  { %v764_v62 = vld [vmem:[#allocation7 + $0x228] sm:$0xff]  ;;  %v865_v30 = vld [vmem:[#allocation7 + $0x550] sm:$0xff] }
 0x201   :  { %v888_v63 = vld [vmem:[#allocation7 + $0x608] sm:$0xff] }
 0x202   :  { %2366 = vmatpush1.bf16.msra.mxu1 %v3403_v48  ;;  %2407 = vmatpush1.bf16.msra.mxu0 %v3531_v49  ;;  %v908_v48 = vld [vmem:[#allocation7 + $0x6a8] sm:$0xff]  ;;  %v3475_v49 = vcombine.low %v784_v35, %v788_v36  ;;  %v729_v36 = vld [vmem:[#allocation7 + $0x110] sm:$0xff] }
 0x203   :  { %2367 = vmatprep.subr.bf16.mxu1 %v3396_v50  ;;  %2408 = vmatprep.subr.bf16.mxu0 %v3524_v51  ;;  %v3603_v50 = vcombine.low %v912_v37, %v916_v39  ;;  %v3468_v51 = vcombine.high %v776_v45, %v780_v46  ;;  %v3596_v52 = vcombine.high %v904_v47, %v908_v48  ;;  %v733_v37 = vld [vmem:[#allocation7 + $0x130] sm:$0xff] }
 0x204   :  { %v857_v39 = vld [vmem:[#allocation7 + $0x510] sm:$0xff] }
 0x206   :  { %2368 = vmatpush1.bf16.msra.mxu1 %v3395_v56  ;;  %2409 = vmatpush1.bf16.msra.mxu0 %v3523_v57  ;;  %v900_v56 = vld [vmem:[#allocation7 + $0x668] sm:$0xff]  ;;  %v3467_v57 = vcombine.low %v776_v45, %v780_v46  ;;  %v721_v46 = vld [vmem:[#allocation7 + $0xd0] sm:$0xff] }
 0x207   :  { %2369 = vmatprep.subr.bf16.mxu1 %v3388_v58  ;;  %2410 = vmatprep.subr.bf16.mxu0 %v3516_v59  ;;  %v3595_v58 = vcombine.low %v904_v47, %v908_v48  ;;  %v3460_v59 = vcombine.high %v768_v53, %v772_v54  ;;  %v3588_v60 = vcombine.high %v896_v55, %v900_v56  ;;  %v725_v47 = vld [vmem:[#allocation7 + $0xf0] sm:$0xff] }
 0x208   :  { %v849_v48 = vld [vmem:[#allocation7 + $0x4d0] sm:$0xff] }
 0x20a   :  { %2370 = vmatpush1.bf16.msra.mxu1 %v3387_v0  ;;  %2411 = vmatpush1.bf16.msra.mxu0 %v3515_v5  ;;  %v892_v0 = vld [vmem:[#allocation7 + $0x628] sm:$0xff]  ;;  %v3459_v5 = vcombine.low %v768_v53, %v772_v54  ;;  %v713_v54 = vld [vmem:[#allocation7 + $0x90] sm:$0xff] }
 0x20b   :  { %2371 = vmatprep.subr.bf16.mxu1 %v3508_v6  ;;  %2412 = vmatprep.subr.bf16.mxu0 %v3636_v7  ;;  %v3587_v6 = vcombine.low %v896_v55, %v900_v56  ;;  %v3452_v7 = vcombine.high %v760_v61, %v764_v62  ;;  %v3580_v8 = vcombine.high %v888_v63, %v892_v0  ;;  %v717_v55 = vld [vmem:[#allocation7 + $0xb0] sm:$0xff] }
 0x20c   :  { %v841_v56 = vld [vmem:[#allocation7 + $0x490] sm:$0xff] }
 0x20e   :  { %2372 = vmatpush2.bf16.msra.mxu1 %v3507_v12  ;;  %2413 = vmatpush2.bf16.msra.mxu0 %v3635_v13  ;;  %v885_v12 = vld [vmem:[#allocation7 + $0x5f0] sm:$0xff]  ;;  %v3451_v13 = vcombine.low %v760_v61, %v764_v62 }
 0x20f   :  { %2373 = vmatprep.subr.bf16.mxu1 %v3500_v14  ;;  %2414 = vmatprep.subr.bf16.mxu0 %v3628_v15  ;;  %v3579_v14 = vcombine.low %v888_v63, %v892_v0  ;;  %v3446_v15 = vcombine.high %v753_v9, %v757_v10  ;;  %v3574_v18 = vcombine.high %v881_v11, %v885_v12  ;;  %v705_v62 = vld [vmem:[#allocation7 + $0x50] sm:$0xff] }
 0x210   :  { %v709_v63 = vld [vmem:[#allocation7 + $0x70] sm:$0xff] }
 0x211   :  { %v833_v0 = vld [vmem:[#allocation7 + $0x450] sm:$0xff] }
 0x212   :  { %2374 = vmatpush2.bf16.msra.mxu1 %v3499_v23  ;;  %2415 = vmatpush2.bf16.msra.mxu0 %v3627_v24  ;;  %v877_v23 = vld [vmem:[#allocation7 + $0x5b0] sm:$0xff]  ;;  %v3445_v24 = vcombine.low %v753_v9, %v757_v10 }
 0x213   :  { %2375 = vmatprep.subr.bf16.mxu1 %v3492_v25  ;;  %2416 = vmatprep.subr.bf16.mxu0 %v3620_v26  ;;  %v3573_v25 = vcombine.low %v881_v11, %v885_v12  ;;  %v3438_v26 = vcombine.high %v745_v20, %v749_v21  ;;  %v3566_v27 = vcombine.high %v873_v22, %v877_v23  ;;  %v697_v10 = vld [vmem:[#allocation7 + $0x10] sm:$0xff] }
 0x214   :  { %v701_v11 = vld [vmem:[#allocation7 + $0x30] sm:$0xff] }
 0x215   :  { %v825_v12 = vld [vmem:[#allocation7 + $0x410] sm:$0xff] }
 0x216   :  { %2376 = vmatpush2.bf16.msra.mxu1 %v3491_v31  ;;  %2417 = vmatpush2.bf16.msra.mxu0 %v3619_v32  ;;  %v869_v31 = vld [vmem:[#allocation7 + $0x570] sm:$0xff]  ;;  %v3437_v32 = vcombine.low %v745_v20, %v749_v21 }
 0x217   :  { %2377 = vmatprep.subr.bf16.mxu1 %v3484_v33  ;;  %2418 = vmatprep.subr.bf16.mxu0 %v3612_v34  ;;  %v3565_v33 = vcombine.low %v873_v22, %v877_v23  ;;  %v3430_v34 = vcombine.high %v737_v28, %v741_v29  ;;  %v3558_v35 = vcombine.high %v865_v30, %v869_v31  ;;  %v817_v21 = vld [vmem:[#allocation7 + $0x3d0] sm:$0xff] }
 0x218   :  { %v821_v22 = vld [vmem:[#allocation7 + $0x3f0] sm:$0xff] }
 0x219   :  { %v945_v23 = vld [vmem:[#allocation7 + $0x7d0] sm:$0xff] }
 0x21a   :  { %2378 = vmatpush2.bf16.msra.mxu1 %v3483_v41  ;;  %2419 = vmatpush2.bf16.msra.mxu0 %v3611_v42  ;;  %v861_v41 = vld [vmem:[#allocation7 + $0x530] sm:$0xff]  ;;  %v3429_v42 = vcombine.low %v737_v28, %v741_v29 }
 0x21b   :  { %2379 = vmatprep.subr.bf16.mxu1 %v3476_v43  ;;  %2420 = vmatprep.subr.bf16.mxu0 %v3604_v44  ;;  %v3557_v43 = vcombine.low %v865_v30, %v869_v31  ;;  %v3422_v44 = vcombine.high %v729_v36, %v733_v37  ;;  %v3550_v45 = vcombine.high %v857_v39, %v861_v41  ;;  %v809_v29 = vld [vmem:[#allocation7 + $0x390] sm:$0xff] }
 0x21c   :  { %v813_v30 = vld [vmem:[#allocation7 + $0x3b0] sm:$0xff] }
 0x21d   :  { %v937_v31 = vld [vmem:[#allocation7 + $0x790] sm:$0xff] }
 0x21e   :  { %2380 = vmatpush2.bf16.msra.mxu1 %v3475_v49  ;;  %2421 = vmatpush2.bf16.msra.mxu0 %v3603_v50  ;;  %v853_v49 = vld [vmem:[#allocation7 + $0x4f0] sm:$0xff]  ;;  %v3421_v50 = vcombine.low %v729_v36, %v733_v37 }
 0x21f   :  { %2381 = vmatprep.subr.bf16.mxu1 %v3468_v51  ;;  %2422 = vmatprep.subr.bf16.mxu0 %v3596_v52  ;;  %v3549_v51 = vcombine.low %v857_v39, %v861_v41  ;;  %v3414_v52 = vcombine.high %v721_v46, %v725_v47  ;;  %v3542_v53 = vcombine.high %v849_v48, %v853_v49  ;;  %v801_v37 = vld [vmem:[#allocation7 + $0x350] sm:$0xff] }
 0x220   :  { %v805_v39 = vld [vmem:[#allocation7 + $0x370] sm:$0xff] }
 0x221   :  { %v929_v41 = vld [vmem:[#allocation7 + $0x750] sm:$0xff] }
 0x222   :  { %2382 = vmatpush2.bf16.msra.mxu1 %v3467_v57  ;;  %2423 = vmatpush2.bf16.msra.mxu0 %v3595_v58  ;;  %v845_v57 = vld [vmem:[#allocation7 + $0x4b0] sm:$0xff]  ;;  %v3413_v58 = vcombine.low %v721_v46, %v725_v47 }
 0x223   :  { %2383 = vmatprep.subr.bf16.mxu1 %v3460_v59  ;;  %2424 = vmatprep.subr.bf16.mxu0 %v3588_v60  ;;  %v3541_v59 = vcombine.low %v849_v48, %v853_v49  ;;  %v3406_v60 = vcombine.high %v713_v54, %v717_v55  ;;  %v3534_v61 = vcombine.high %v841_v56, %v845_v57  ;;  %v793_v47 = vld [vmem:[#allocation7 + $0x310] sm:$0xff] }
 0x224   :  { %v797_v48 = vld [vmem:[#allocation7 + $0x330] sm:$0xff] }
 0x225   :  { %v921_v49 = vld [vmem:[#allocation7 + $0x710] sm:$0xff] }
 0x226   :  { %2384 = vmatpush2.bf16.msra.mxu1 %v3459_v5  ;;  %2425 = vmatpush2.bf16.msra.mxu0 %v3587_v6  ;;  %v837_v5 = vld [vmem:[#allocation7 + $0x470] sm:$0xff]  ;;  %v3405_v6 = vcombine.low %v713_v54, %v717_v55 }
 0x227   :  { %2385 = vmatprep.subr.bf16.mxu1 %v3452_v7  ;;  %2426 = vmatprep.subr.bf16.mxu0 %v3580_v8  ;;  %v3533_v7 = vcombine.low %v841_v56, %v845_v57  ;;  %v3398_v8 = vcombine.high %v705_v62, %v709_v63  ;;  %v3526_v9 = vcombine.high %v833_v0, %v837_v5  ;;  %v785_v55 = vld [vmem:[#allocation7 + $0x2d0] sm:$0xff] }
 0x228   :  { %v789_v56 = vld [vmem:[#allocation7 + $0x2f0] sm:$0xff] }
 0x229   :  { %v913_v57 = vld [vmem:[#allocation7 + $0x6d0] sm:$0xff] }
 0x22a   :  { %2386 = vmatpush2.bf16.msra.mxu1 %v3451_v13  ;;  %2427 = vmatpush2.bf16.msra.mxu0 %v3579_v14  ;;  %v829_v13 = vld [vmem:[#allocation7 + $0x430] sm:$0xff]  ;;  %v3397_v14 = vcombine.low %v705_v62, %v709_v63 }
 0x22b   :  { %2437 = vmatprep.subr.bf16.mxu1 %v3446_v15  ;;  %2478 = vmatprep.subr.bf16.mxu0 %v3574_v18  ;;  %v3525_v15 = vcombine.low %v833_v0, %v837_v5  ;;  %v3390_v18 = vcombine.high %v697_v10, %v701_v11  ;;  %v3518_v20 = vcombine.high %v825_v12, %v829_v13  ;;  %v777_v63 = vld [vmem:[#allocation7 + $0x290] sm:$0xff] }
 0x22c   :  { %v781_v0 = vld [vmem:[#allocation7 + $0x2b0] sm:$0xff] }
 0x22d   :  { %2388 = vmatmul.mubr.bf16.vlgmr.msra.gmra.mxu1 %v4243_v3  ;;  %2429 = vmatmul.mubr.bf16.vlgmr.msra.gmra.mxu0 %v4245_v4  ;;  %v905_v5 = vld [vmem:[#allocation7 + $0x690] sm:$0xff] }
 0x22e   :  { %2438 = vmatpush1.bf16.msra.mxu1 %v3445_v24  ;;  %2469 = vmatprep.mubr.bf16.mxu1 %v4239_v1  ;;  %v949_v24 = vld [vmem:[#allocation7 + $0x7f0] sm:$0xff] }
 0x22f   :  { %2479 = vmatpush1.bf16.msra.mxu0 %v3573_v25  ;;  %2510 = vmatprep.mubr.bf16.mxu0 %v4241_v2  ;;  %v3389_v25 = vcombine.low %v697_v10, %v701_v11  ;;  %v3638_v28 = vcombine.high %v945_v23, %v949_v24  ;;  %v769_v11 = vld [vmem:[#allocation7 + $0x250] sm:$0xff] }
 0x230   :  { %2439 = vmatprep.subr.bf16.mxu1 %v3438_v26  ;;  %2480 = vmatprep.subr.bf16.mxu0 %v3566_v27  ;;  %v3517_v26 = vcombine.low %v825_v12, %v829_v13  ;;  %v3510_v27 = vcombine.high %v817_v21, %v821_v22  ;;  %v773_v12 = vld [vmem:[#allocation7 + $0x270] sm:$0xff] }
 0x231   :  { %v897_v13 = vld [vmem:[#allocation7 + $0x650] sm:$0xff] }
 0x232   :  { %2440 = vmatpush1.bf16.msra.mxu1 %v3437_v32  ;;  %v941_v32 = vld [vmem:[#allocation7 + $0x7b0] sm:$0xff] }
 0x233   :  { %2481 = vmatpush1.bf16.msra.mxu0 %v3565_v33  ;;  %2441 = vmatprep.subr.bf16.mxu1 %v3430_v34  ;;  %v3509_v33 = vcombine.low %v817_v21, %v821_v22  ;;  %v3637_v34 = vcombine.low %v945_v23, %v949_v24  ;;  %v3630_v36 = vcombine.high %v937_v31, %v941_v32  ;;  %v761_v22 = vld [vmem:[#allocation7 + $0x210] sm:$0xff] }
 0x234   :  { %2482 = vmatprep.subr.bf16.mxu0 %v3558_v35  ;;  %v3502_v35 = vcombine.high %v809_v29, %v813_v30  ;;  %v765_v23 = vld [vmem:[#allocation7 + $0x230] sm:$0xff] }
 0x235   :  { %v889_v24 = vld [vmem:[#allocation7 + $0x610] sm:$0xff] }
 0x236   :  { %2442 = vmatpush1.bf16.msra.mxu1 %v3429_v42  ;;  %v933_v42 = vld [vmem:[#allocation7 + $0x770] sm:$0xff] }
 0x237   :  { %2483 = vmatpush1.bf16.msra.mxu0 %v3557_v43  ;;  %2443 = vmatprep.subr.bf16.mxu1 %v3422_v44  ;;  %v3501_v43 = vcombine.low %v809_v29, %v813_v30  ;;  %v3629_v44 = vcombine.low %v937_v31, %v941_v32  ;;  %v3622_v46 = vcombine.high %v929_v41, %v933_v42  ;;  %v754_v30 = vld [vmem:[#allocation7 + $0x1d8] sm:$0xff] }
 0x238   :  { %2484 = vmatprep.subr.bf16.mxu0 %v3550_v45  ;;  %v3494_v45 = vcombine.high %v801_v37, %v805_v39  ;;  %v758_v31 = vld [vmem:[#allocation7 + $0x1f8] sm:$0xff] }
 0x239   :  { %v882_v32 = vld [vmem:[#allocation7 + $0x5d8] sm:$0xff] }
 0x23a   :  { %2444 = vmatpush1.bf16.msra.mxu1 %v3421_v50  ;;  %v925_v50 = vld [vmem:[#allocation7 + $0x730] sm:$0xff] }
 0x23b   :  { %2485 = vmatpush1.bf16.msra.mxu0 %v3549_v51  ;;  %2445 = vmatprep.subr.bf16.mxu1 %v3414_v52  ;;  %v3493_v51 = vcombine.low %v801_v37, %v805_v39  ;;  %v3621_v52 = vcombine.low %v929_v41, %v933_v42  ;;  %v3614_v54 = vcombine.high %v921_v49, %v925_v50  ;;  %v746_v39 = vld [vmem:[#allocation7 + $0x198] sm:$0xff] }
 0x23c   :  { %2486 = vmatprep.subr.bf16.mxu0 %v3542_v53  ;;  %v3486_v53 = vcombine.high %v793_v47, %v797_v48  ;;  %v750_v41 = vld [vmem:[#allocation7 + $0x1b8] sm:$0xff]  ;;  %v3447_v42 = vcombine.low %v754_v30, %v758_v31 }
 0x23e   :  { %2446 = vmatpush1.bf16.msra.mxu1 %v3413_v58  ;;  %v917_v58 = vld [vmem:[#allocation7 + $0x6f0] sm:$0xff] }
 0x23f   :  { %2487 = vmatpush1.bf16.msra.mxu0 %v3541_v59  ;;  %2447 = vmatprep.subr.bf16.mxu1 %v3406_v60  ;;  %v3485_v59 = vcombine.low %v793_v47, %v797_v48  ;;  %v3613_v60 = vcombine.low %v921_v49, %v925_v50  ;;  %v3606_v62 = vcombine.high %v913_v57, %v917_v58  ;;  %v738_v47 = vld [vmem:[#allocation7 + $0x158] sm:$0xff] }
 0x240   :  { %2488 = vmatprep.subr.bf16.mxu0 %v3534_v61  ;;  %v3478_v61 = vcombine.high %v785_v55, %v789_v56  ;;  %v742_v48 = vld [vmem:[#allocation7 + $0x178] sm:$0xff] }
 0x241   :  { %v866_v50 = vld [vmem:[#allocation7 + $0x558] sm:$0xff] }
 0x242   :  { %2448 = vmatpush1.bf16.msra.mxu1 %v3405_v6  ;;  %v909_v6 = vld [vmem:[#allocation7 + $0x6b0] sm:$0xff] }
 0x243   :  { %2489 = vmatpush1.bf16.msra.mxu0 %v3533_v7  ;;  %2449 = vmatprep.subr.bf16.mxu1 %v3398_v8  ;;  %v3477_v7 = vcombine.low %v785_v55, %v789_v56  ;;  %v3605_v8 = vcombine.low %v913_v57, %v917_v58  ;;  %v3598_v10 = vcombine.high %v905_v5, %v909_v6  ;;  %v730_v56 = vld [vmem:[#allocation7 + $0x118] sm:$0xff] }
 0x244   :  { %2490 = vmatprep.subr.bf16.mxu0 %v3526_v9  ;;  %v3470_v9 = vcombine.high %v777_v63, %v781_v0  ;;  %v734_v57 = vld [vmem:[#allocation7 + $0x138] sm:$0xff] }
 0x245   :  { %v858_v58 = vld [vmem:[#allocation7 + $0x518] sm:$0xff] }
 0x246   :  { %2450 = vmatpush1.bf16.msra.mxu1 %v3397_v14  ;;  %v901_v14 = vld [vmem:[#allocation7 + $0x670] sm:$0xff] }
 0x247   :  { %2491 = vmatpush1.bf16.msra.mxu0 %v3525_v15  ;;  %2451 = vmatprep.subr.bf16.mxu1 %v3390_v18  ;;  %v3469_v15 = vcombine.low %v777_v63, %v781_v0  ;;  %v3597_v18 = vcombine.low %v905_v5, %v909_v6  ;;  %v3590_v21 = vcombine.high %v897_v13, %v901_v14  ;;  %v722_v63 = vld [vmem:[#allocation7 + $0xd8] sm:$0xff] }
 0x248   :  { %2492 = vmatprep.subr.bf16.mxu0 %v3518_v20  ;;  %v3462_v20 = vcombine.high %v769_v11, %v773_v12  ;;  %v726_v0 = vld [vmem:[#allocation7 + $0xf8] sm:$0xff] }
 0x249   :  { %v850_v5 = vld [vmem:[#allocation7 + $0x4d8] sm:$0xff] }
 0x24a   :  { %2452 = vmatpush1.bf16.msra.mxu1 %v3389_v25  ;;  %v893_v25 = vld [vmem:[#allocation7 + $0x630] sm:$0xff]  ;;  %v854_v6 = vld [vmem:[#allocation7 + $0x4f8] sm:$0xff] }
 0x24b   :  { %2493 = vmatpush1.bf16.msra.mxu0 %v3517_v26  ;;  %2453 = vmatprep.subr.bf16.mxu1 %v3510_v27  ;;  %v3461_v26 = vcombine.low %v769_v11, %v773_v12  ;;  %v3589_v27 = vcombine.low %v897_v13, %v901_v14  ;;  %v3582_v29 = vcombine.high %v889_v24, %v893_v25  ;;  %v718_v11 = vld [vmem:[#allocation7 + $0xb8] sm:$0xff] }
 0x24c   :  { %2494 = vmatprep.subr.bf16.mxu0 %v3638_v28  ;;  %v3454_v28 = vcombine.high %v761_v22, %v765_v23  ;;  %v842_v12 = vld [vmem:[#allocation7 + $0x498] sm:$0xff]  ;;  %v3415_v14 = vcombine.low %v722_v63, %v726_v0 }
 0x24d   :  { %v846_v13 = vld [vmem:[#allocation7 + $0x4b8] sm:$0xff] }
 0x24e   :  { %2454 = vmatpush2.bf16.msra.mxu1 %v3509_v33  ;;  %v886_v33 = vld [vmem:[#allocation7 + $0x5f8] sm:$0xff] }
 0x24f   :  { %2495 = vmatpush2.bf16.msra.mxu0 %v3637_v34  ;;  %2455 = vmatprep.subr.bf16.mxu1 %v3502_v35  ;;  %v3453_v34 = vcombine.low %v761_v22, %v765_v23  ;;  %v3581_v35 = vcombine.low %v889_v24, %v893_v25  ;;  %v3576_v37 = vcombine.high %v882_v32, %v886_v33  ;;  %v710_v22 = vld [vmem:[#allocation7 + $0x78] sm:$0xff] }
 0x250   :  { %2496 = vmatprep.subr.bf16.mxu0 %v3630_v36  ;;  %v3448_v36 = vcombine.high %v754_v30, %v758_v31  ;;  %v834_v23 = vld [vmem:[#allocation7 + $0x458] sm:$0xff] }
 0x251   :  { %v838_v24 = vld [vmem:[#allocation7 + $0x478] sm:$0xff] }
 0x252   :  { %2456 = vmatpush2.bf16.msra.mxu1 %v3501_v43  ;;  %v874_v43 = vld [vmem:[#allocation7 + $0x598] sm:$0xff] }
 0x253   :  { %2497 = vmatpush2.bf16.msra.mxu0 %v3629_v44  ;;  %2457 = vmatprep.subr.bf16.mxu1 %v3494_v45  ;;  %v878_v44 = vld [vmem:[#allocation7 + $0x5b8] sm:$0xff]  ;;  %v3575_v45 = vcombine.low %v882_v32, %v886_v33 }
 0x254   :  { %2498 = vmatprep.subr.bf16.mxu0 %v3622_v46  ;;  %v3440_v46 = vcombine.high %v746_v39, %v750_v41  ;;  %v3568_v49 = vcombine.high %v874_v43, %v878_v44  ;;  %v702_v30 = vld [vmem:[#allocation7 + $0x38] sm:$0xff] }
 0x255   :  { %v826_v31 = vld [vmem:[#allocation7 + $0x418] sm:$0xff] }
 0x256   :  { %2458 = vmatpush2.bf16.msra.mxu1 %v3493_v51  ;;  %v870_v51 = vld [vmem:[#allocation7 + $0x578] sm:$0xff] }
 0x257   :  { %2499 = vmatpush2.bf16.msra.mxu0 %v3621_v52  ;;  %2459 = vmatprep.subr.bf16.mxu1 %v3486_v53  ;;  %v3439_v52 = vcombine.low %v746_v39, %v750_v41  ;;  %v3567_v53 = vcombine.low %v874_v43, %v878_v44  ;;  %v3560_v55 = vcombine.high %v866_v50, %v870_v51  ;;  %v830_v32 = vld [vmem:[#allocation7 + $0x438] sm:$0xff] }
 0x258   :  { %2500 = vmatprep.subr.bf16.mxu0 %v3614_v54  ;;  %v3432_v54 = vcombine.high %v738_v47, %v742_v48  ;;  %v822_v39 = vld [vmem:[#allocation7 + $0x3f8] sm:$0xff]  ;;  %v3519_v44 = vcombine.low %v826_v31, %v830_v32 }
 0x259   :  { %v946_v41 = vld [vmem:[#allocation7 + $0x7d8] sm:$0xff] }
 0x25a   :  { %2460 = vmatpush2.bf16.msra.mxu1 %v3485_v59  ;;  %v862_v59 = vld [vmem:[#allocation7 + $0x538] sm:$0xff] }
 0x25b   :  { %2501 = vmatpush2.bf16.msra.mxu0 %v3613_v60  ;;  %2461 = vmatprep.subr.bf16.mxu1 %v3478_v61  ;;  %v3431_v60 = vcombine.low %v738_v47, %v742_v48  ;;  %v3559_v61 = vcombine.low %v866_v50, %v870_v51  ;;  %v810_v47 = vld [vmem:[#allocation7 + $0x398] sm:$0xff] }
 0x25c   :  { %2502 = vmatprep.subr.bf16.mxu0 %v3606_v62  ;;  %v3424_v62 = vcombine.high %v730_v56, %v734_v57  ;;  %v814_v48 = vld [vmem:[#allocation7 + $0x3b8] sm:$0xff] }
 0x25d   :  { %v942_v50 = vld [vmem:[#allocation7 + $0x7b8] sm:$0xff] }
 0x25e   :  { %2462 = vmatpush2.bf16.msra.mxu1 %v3477_v7  ;;  %v3551_v7 = vcombine.low %v858_v58, %v862_v59 }
 0x25f   :  { %2503 = vmatpush2.bf16.msra.mxu0 %v3605_v8  ;;  %2463 = vmatprep.subr.bf16.mxu1 %v3470_v9  ;;  %v3416_v8 = vcombine.high %v722_v63, %v726_v0  ;;  %v3544_v9 = vcombine.high %v850_v5, %v854_v6  ;;  %v798_v63 = vld [vmem:[#allocation7 + $0x338] sm:$0xff] }
 0x260   :  { %2504 = vmatprep.subr.bf16.mxu0 %v3598_v10  ;;  %v714_v10 = vld [vmem:[#allocation7 + $0x98] sm:$0xff] }
 0x261   :  { %v3407_v25 = vcombine.low %v714_v10, %v718_v11  ;;  %v922_v0 = vld [vmem:[#allocation7 + $0x718] sm:$0xff] }
 0x262   :  { %2464 = vmatpush2.bf16.msra.mxu1 %v3469_v15  ;;  %v3543_v15 = vcombine.low %v850_v5, %v854_v6  ;;  %v926_v5 = vld [vmem:[#allocation7 + $0x738] sm:$0xff] }
 0x263   :  { %2505 = vmatpush2.bf16.msra.mxu0 %v3597_v18  ;;  %2465 = vmatprep.subr.bf16.mxu1 %v3462_v20  ;;  %v3408_v18 = vcombine.high %v714_v10, %v718_v11  ;;  %v3536_v20 = vcombine.high %v842_v12, %v846_v13  ;;  %v790_v10 = vld [vmem:[#allocation7 + $0x2f8] sm:$0xff] }
 0x264   :  { %2506 = vmatprep.subr.bf16.mxu0 %v3590_v21  ;;  %v706_v21 = vld [vmem:[#allocation7 + $0x58] sm:$0xff] }
 0x265   :  { %v3399_v33 = vcombine.low %v706_v21, %v710_v22  ;;  %v914_v11 = vld [vmem:[#allocation7 + $0x6d8] sm:$0xff] }
 0x266   :  { %2466 = vmatpush2.bf16.msra.mxu1 %v3461_v26  ;;  %v3535_v26 = vcombine.low %v842_v12, %v846_v13  ;;  %v918_v12 = vld [vmem:[#allocation7 + $0x6f8] sm:$0xff] }
 0x267   :  { %2507 = vmatpush2.bf16.msra.mxu0 %v3589_v27  ;;  %2467 = vmatprep.subr.bf16.mxu1 %v3454_v28  ;;  %v3400_v27 = vcombine.high %v706_v21, %v710_v22  ;;  %v3528_v28 = vcombine.high %v834_v23, %v838_v24  ;;  %v782_v21 = vld [vmem:[#allocation7 + $0x2b8] sm:$0xff] }
 0x268   :  { %2508 = vmatprep.subr.bf16.mxu0 %v3582_v29  ;;  %v698_v29 = vld [vmem:[#allocation7 + $0x18] sm:$0xff] }
 0x269   :  { %v3391_v43 = vcombine.low %v698_v29, %v702_v30  ;;  %v906_v22 = vld [vmem:[#allocation7 + $0x698] sm:$0xff] }
 0x26a   :  { %2468 = vmatpush2.bf16.msra.mxu1 %v3453_v34  ;;  %v3527_v34 = vcombine.low %v834_v23, %v838_v24  ;;  %v910_v23 = vld [vmem:[#allocation7 + $0x6b8] sm:$0xff] }
 0x26b   :  { %2509 = vmatpush2.bf16.msra.mxu0 %v3581_v35  ;;  %2519 = vmatprep.subr.bf16.mxu1 %v3448_v36  ;;  %v3392_v35 = vcombine.high %v698_v29, %v702_v30  ;;  %v3520_v36 = vcombine.high %v826_v31, %v830_v32  ;;  %v774_v29 = vld [vmem:[#allocation7 + $0x278] sm:$0xff] }
 0x26c   :  { %2560 = vmatprep.subr.bf16.mxu0 %v3576_v37  ;;  %v818_v37 = vld [vmem:[#allocation7 + $0x3d8] sm:$0xff] }
 0x26d   :  { %2470 = vmatmul.mubr.bf16.vlgmr.msra.gmra.mxu1 %v4243_v3  ;;  %v3511_v51 = vcombine.low %v818_v37, %v822_v39  ;;  %v898_v30 = vld [vmem:[#allocation7 + $0x658] sm:$0xff] }
 0x26e   :  { %2511 = vmatmul.mubr.bf16.vlgmr.msra.gmra.mxu0 %v4245_v4  ;;  %2520 = vmatpush1.bf16.msra.mxu1 %v3447_v42  ;;  %v950_v42 = vld [vmem:[#allocation7 + $0x7f8] sm:$0xff] }
 0x26f   :  { %2551 = vmatprep.mubr.bf16.mxu1 %v4239_v1  ;;  %2561 = vmatpush1.bf16.msra.mxu0 %v3575_v45  ;;  %v3552_v1 = vcombine.high %v858_v58, %v862_v59  ;;  %v3512_v45 = vcombine.high %v818_v37, %v822_v39  ;;  %v934_v58 = vld [vmem:[#allocation7 + $0x778] sm:$0xff]  ;;  %v3503_v59 = vcombine.low %v810_v47, %v814_v48 }
 0x270   :  { %2592 = vmatprep.mubr.bf16.mxu0 %v4241_v2  ;;  %2521 = vmatprep.subr.bf16.mxu1 %v3440_v46  ;;  %v3423_v2 = vcombine.low %v730_v56, %v734_v57  ;;  %v3640_v46 = vcombine.high %v946_v41, %v950_v42  ;;  %v806_v56 = vld [vmem:[#allocation7 + $0x378] sm:$0xff] }
 0x271   :  { %2562 = vmatprep.subr.bf16.mxu0 %v3568_v49  ;;  %v938_v49 = vld [vmem:[#allocation7 + $0x798] sm:$0xff] }
 0x272   :  { %2522 = vmatpush1.bf16.msra.mxu1 %v3439_v52  ;;  %v3639_v52 = vcombine.low %v946_v41, %v950_v42  ;;  %v930_v57 = vld [vmem:[#allocation7 + $0x758] sm:$0xff] }
 0x273   :  { %2563 = vmatpush1.bf16.msra.mxu0 %v3567_v53  ;;  %2523 = vmatprep.subr.bf16.mxu1 %v3432_v54  ;;  %v3504_v53 = vcombine.high %v810_v47, %v814_v48  ;;  %v3632_v54 = vcombine.high %v938_v49, %v942_v50  ;;  %v902_v31 = vld [vmem:[#allocation7 + $0x678] sm:$0xff]  ;;  %v3912_v48 = vld [vmem:[#allocation10 + $0x78] sm:$0xff]  }
 0x274   :  { %2564 = vmatprep.subr.bf16.mxu0 %v3560_v55  ;;  %v802_v55 = vld [vmem:[#allocation7 + $0x358] sm:$0xff] }
 0x275   :  { %v3495_v6 = vcombine.low %v802_v55, %v806_v56  ;;  %v766_v37 = vld [vmem:[#allocation7 + $0x238] sm:$0xff] }
 0x276   :  { %2524 = vmatpush1.bf16.msra.mxu1 %v3431_v60  ;;  %v3631_v60 = vcombine.low %v938_v49, %v942_v50  ;;  %v890_v39 = vld [vmem:[#allocation7 + $0x618] sm:$0xff]  ;;  %v3928_v49 = vld [vmem:[#allocation10 + $0xf8] sm:$0xff]  }
 0x277   :  { %2565 = vmatpush1.bf16.msra.mxu0 %v3559_v61  ;;  %2525 = vmatprep.subr.bf16.mxu1 %v3424_v62  ;;  %v3496_v61 = vcombine.high %v802_v55, %v806_v56  ;;  %v3624_v62 = vcombine.high %v930_v57, %v934_v58  ;;  %v894_v41 = vld [vmem:[#allocation7 + $0x638] sm:$0xff]  ;;  %v3913_v50 = vld [vmem:[#allocation10 + $0x38] sm:$0xff]  }
 0x278   :  { %2566 = vmatprep.subr.bf16.mxu0 %v3552_v1  ;;  %v794_v1 = vld [vmem:[#allocation7 + $0x318] sm:$0xff]  ;;  %v3583_v47 = vcombine.low %v890_v39, %v894_v41 }
 0x279   :  { %v3487_v13 = vcombine.low %v794_v1, %v798_v63  ;;  %v3930_v55 = vld [vmem:[#allocation10 + $0xf0] sm:$0xff]  }
 0x27a   :  { %2526 = vmatpush1.bf16.msra.mxu1 %v3423_v2  ;;  %v3623_v2 = vcombine.low %v930_v57, %v934_v58  ;;  %v3915_v58 = vld [vmem:[#allocation10 + $0x30] sm:$0xff]  }
 0x27b   :  { %2567 = vmatpush1.bf16.msra.mxu0 %v3551_v7  ;;  %2527 = vmatprep.subr.bf16.mxu1 %v3416_v8  ;;  %v3488_v7 = vcombine.high %v794_v1, %v798_v63  ;;  %v3616_v8 = vcombine.high %v922_v0, %v926_v5  ;;  %v3932_v63 = vld [vmem:[#allocation10 + $0xe8] sm:$0xff]  }
 0x27c   :  { %2568 = vmatprep.subr.bf16.mxu0 %v3544_v9  ;;  %v786_v9 = vld [vmem:[#allocation7 + $0x2d8] sm:$0xff] }
 0x27d   :  { %v3479_v24 = vcombine.low %v786_v9, %v790_v10 }
 0x27e   :  { %2528 = vmatpush1.bf16.msra.mxu1 %v3415_v14  ;;  %v3615_v14 = vcombine.low %v922_v0, %v926_v5 }
 0x27f   :  { %2569 = vmatpush1.bf16.msra.mxu0 %v3543_v15  ;;  %2529 = vmatprep.subr.bf16.mxu1 %v3408_v18  ;;  %v3480_v15 = vcombine.high %v786_v9, %v790_v10  ;;  %v3608_v18 = vcombine.high %v914_v11, %v918_v12  ;;  %v3934_v9 = vld [vmem:[#allocation10 + $0xe0] sm:$0xff]  }
 0x280   :  { %2570 = vmatprep.subr.bf16.mxu0 %v3536_v20  ;;  %v778_v20 = vld [vmem:[#allocation7 + $0x298] sm:$0xff] }
 0x281   :  { %v3471_v32 = vcombine.low %v778_v20, %v782_v21 }
 0x282   :  { %2530 = vmatpush1.bf16.msra.mxu1 %v3407_v25  ;;  %v3607_v25 = vcombine.low %v914_v11, %v918_v12  ;;  %v3919_v11 = vld [vmem:[#allocation10 + $0x20] sm:$0xff]   ;;  %v3920_v12 = vld [vmem:[#allocation10 + $0x58] sm:$0xff]  }
 0x283   :  { %2571 = vmatpush1.bf16.msra.mxu0 %v3535_v26  ;;  %2531 = vmatprep.subr.bf16.mxu1 %v3400_v27  ;;  %v3472_v26 = vcombine.high %v778_v20, %v782_v21  ;;  %v3600_v27 = vcombine.high %v906_v22, %v910_v23  ;;  %v3922_v20 = vld [vmem:[#allocation10 + $0x50] sm:$0xff]   ;;  %v3937_v21 = vld [vmem:[#allocation10 + $0x98] sm:$0xff]  }
 0x284   :  { %2572 = vmatprep.subr.bf16.mxu0 %v3528_v28  ;;  %v770_v28 = vld [vmem:[#allocation7 + $0x258] sm:$0xff] }
 0x285   :  { %v3463_v42 = vcombine.low %v770_v28, %v774_v29 }
 0x286   :  { %2532 = vmatpush1.bf16.msra.mxu1 %v3399_v33  ;;  %v3599_v33 = vcombine.low %v906_v22, %v910_v23  ;;  %v3938_v22 = vld [vmem:[#allocation10 + $0xd0] sm:$0xff]  }
 0x287   :  { %2573 = vmatpush1.bf16.msra.mxu0 %v3527_v34  ;;  %2533 = vmatprep.subr.bf16.mxu1 %v3392_v35  ;;  %v3464_v34 = vcombine.high %v770_v28, %v774_v29  ;;  %v3592_v35 = vcombine.high %v898_v30, %v902_v31  ;;  %v3923_v23 = vld [vmem:[#allocation10 + $0x10] sm:$0xff]   ;;  %v3925_v28 = vld [vmem:[#allocation10 + $0x8] sm:$0xff]  }
 0x288   :  { %2574 = vmatprep.subr.bf16.mxu0 %v3520_v36  ;;  %v762_v36 = vld [vmem:[#allocation7 + $0x218] sm:$0xff] }
 0x28a   :  { %2534 = vmatpush1.bf16.msra.mxu1 %v3391_v43  ;;  %v3591_v43 = vcombine.low %v898_v30, %v902_v31  ;;  %v3941_v30 = vld [vmem:[#allocation10 + $0x88] sm:$0xff]   ;;  %v3942_v31 = vld [vmem:[#allocation10 + $0xc0] sm:$0xff]  }
 0x28b   :  { %2575 = vmatpush1.bf16.msra.mxu0 %v3519_v44  ;;  %2535 = vmatprep.subr.bf16.mxu1 %v3512_v45  ;;  %v3456_v44 = vcombine.high %v762_v36, %v766_v37  ;;  %v3584_v45 = vcombine.high %v890_v39, %v894_v41  ;;  %v3946_v41 = vld [vmem:[#allocation10 + $0x170] sm:$0xff]  }
 0x28c   :  { %2576 = vmatprep.subr.bf16.mxu0 %v3640_v46  ;;  %v3455_v46 = vcombine.low %v762_v36, %v766_v37  ;;  %v3960_v36 = vld [vmem:[#allocation10 + $0x1f8] sm:$0xff]  }
 0x28d   :  { %v3945_v37 = vld [vmem:[#allocation10 + $0x138] sm:$0xff]  }
 0x28e   :  { %2536 = vmatpush2.bf16.msra.mxu1 %v3511_v51  ;;  %v4261_v51 = vld [vmem:[#allocation8] sm:$0xff] }
 0x28f   :  { %2577 = vmatpush2.bf16.msra.mxu0 %v3639_v52  ;;  %2537 = vmatprep.subr.bf16.mxu1 %v3504_v53  ;;  %v3914_v52 = vld [vmem:[#allocation10 + $0x70] sm:$0xff]   ;;  %v3929_v53 = vld [vmem:[#allocation10 + $0xb8] sm:$0xff]  }
 0x290   :  { %2578 = vmatprep.subr.bf16.mxu0 %v3632_v54  ;;  %v960_v54 = vrot.slane %v4261_v51, %v4224_v19 }
 0x292   :  { %2538 = vmatpush2.bf16.msra.mxu1 %v3503_v59 }
 0x293   :  { %2579 = vmatpush2.bf16.msra.mxu0 %v3631_v60  ;;  %2539 = vmatprep.subr.bf16.mxu1 %v3496_v61  ;;  %v3916_v61 = vld [vmem:[#allocation10 + $0x68] sm:$0xff]  }
 0x294   :  { %2580 = vmatprep.subr.bf16.mxu0 %v3624_v62  ;;  %v3931_v62 = vld [vmem:[#allocation10 + $0xb0] sm:$0xff]  }
 0x296   :  { %2540 = vmatpush2.bf16.msra.mxu1 %v3495_v6 }
 0x297   :  { %2581 = vmatpush2.bf16.msra.mxu0 %v3623_v2  ;;  %2541 = vmatprep.subr.bf16.mxu1 %v3488_v7  ;;  %v3933_v7 = vld [vmem:[#allocation10 + $0xa8] sm:$0xff]  }
 0x298   :  { %2582 = vmatprep.subr.bf16.mxu0 %v3616_v8 }
 0x29a   :  { %2542 = vmatpush2.bf16.msra.mxu1 %v3487_v13  ;;  %v3935_v13 = vld [vmem:[#allocation10 + $0xa0] sm:$0xff]  }
 0x29b   :  { %2583 = vmatpush2.bf16.msra.mxu0 %v3615_v14  ;;  %2543 = vmatprep.subr.bf16.mxu1 %v3480_v15  ;;  %v3936_v14 = vld [vmem:[#allocation10 + $0xd8] sm:$0xff]  }
 0x29c   :  { %2584 = vmatprep.subr.bf16.mxu0 %v3608_v18  ;;  %v3921_v15 = vld [vmem:[#allocation10 + $0x18] sm:$0xff]   ;;  %v956_v18 = vrot.slane %v4261_v51, %v4218_v17  ;;  %v3926_v17 = vld [vmem:[#allocation10 + $0x40] sm:$0xff]  }
 0x29e   :  { %2544 = vmatpush2.bf16.msra.mxu1 %v3479_v24 }
 0x29f   :  { %2585 = vmatpush2.bf16.msra.mxu0 %v3607_v25  ;;  %2545 = vmatprep.subr.bf16.mxu1 %v3472_v26  ;;  %v3924_v25 = vld [vmem:[#allocation10 + $0x48] sm:$0xff]   ;;  %v3939_v26 = vld [vmem:[#allocation10 + $0x90] sm:$0xff]  }
 0x2a0   :  { %2586 = vmatprep.subr.bf16.mxu0 %v3600_v27  ;;  %v3940_v27 = vld [vmem:[#allocation10 + $0xc8] sm:$0xff]  }
 0x2a2   :  { %2546 = vmatpush2.bf16.msra.mxu1 %v3471_v32  ;;  %v3927_v32 = vld [vmem:[#allocation10] sm:$0xff]  }
 0x2a3   :  { %2587 = vmatpush2.bf16.msra.mxu0 %v3599_v33  ;;  %2547 = vmatprep.subr.bf16.mxu1 %v3464_v34  ;;  %v3943_v34 = vld [vmem:[#allocation10 + $0x80] sm:$0xff]  }
 0x2a4   :  { %2588 = vmatprep.subr.bf16.mxu0 %v3592_v35  ;;  %v3944_v35 = vld [vmem:[#allocation10 + $0x178] sm:$0xff]  }
 0x2a6   :  { %2548 = vmatpush2.bf16.msra.mxu1 %v3463_v42  ;;  %v3947_v42 = vld [vmem:[#allocation10 + $0x130] sm:$0xff]  }
 0x2a7   :  { %2589 = vmatpush2.bf16.msra.mxu0 %v3591_v43  ;;  %2549 = vmatprep.subr.bf16.mxu1 %v3456_v44  ;;  %v3948_v43 = vld [vmem:[#allocation10 + $0x168] sm:$0xff]  }
 0x2a8   :  { %2590 = vmatprep.subr.bf16.mxu0 %v3584_v45  ;;  %v3949_v44 = vld [vmem:[#allocation10 + $0x128] sm:$0xff]   ;;  %v3950_v45 = vld [vmem:[#allocation10 + $0x160] sm:$0xff]  }
 0x2aa   :  { %2550 = vmatpush2.bf16.msra.mxu1 %v3455_v46  ;;  %v3951_v46 = vld [vmem:[#allocation10 + $0x120] sm:$0xff]  }
 0x2ab   :  { %2591 = vmatpush2.bf16.msra.mxu0 %v3583_v47  ;;  %3706 = vmatprep.subr.bf16.mxu1 %v3912_v48  ;;  %v3952_v47 = vld [vmem:[#allocation10 + $0x158] sm:$0xff]  }
 0x2ac   :  { %3728 = vmatprep.subr.bf16.mxu0 %v3928_v49  ;;  %v3953_v48 = vld [vmem:[#allocation10 + $0x118] sm:$0xff]   ;;  %v3954_v49 = vld [vmem:[#allocation10 + $0x150] sm:$0xff]  }
 0x2ad   :  { %2552 = vmatmul.mubr.bf16.vlgmr.msra.gmra.mxu1 %v4243_v3  ;;  %v2307_v56 = vpop.f32.mrf.mxu1  ;;  %v2348_v57 = vpop.f32.mrf.mxu0  ;;  %v3917_v3 = vld [vmem:[#allocation10 + $0x28] sm:$0xff]  }
 0x2ae   :  { %2593 = vmatmul.mubr.bf16.vlgmr.msra.gmra.mxu0 %v4245_v4  ;;  %3707 = vmatpush3.bf16.msra.mxu1 %v3913_v50  ;;  %v3918_v4 = vld [vmem:[#allocation10 + $0x60] sm:$0xff]   ;;  %v2308_v24 = vadd.f32 %v2307_v56, %v956_v18  ;;  %v3955_v50 = vld [vmem:[#allocation10 + $0x110] sm:$0xff]   ;;  %v964_v56 = vrot.slane %v4261_v51, %v275_v38 }
 0x2af   :  { %v2309_v59 = vpop.f32.mrf.mxu1  ;;  %v2350_v60 = vpop.f32.mrf.mxu0  ;;  %3708 = vmatprep.subr.bf16.mxu1 %v3914_v52  ;;  %3729 = vmatpush3.bf16.msra.mxu0 %v3929_v53  ;;  %v3956_v52 = vld [vmem:[#allocation10 + $0x148] sm:$0xff]   ;;  %v3970_v18 = vld [vmem:[#allocation10 + $0x1d0] sm:$0xff]  }
 0x2b0   :  { %v2310_v1 = vadd.f32 %v2309_v59, %v960_v54  ;;  %3730 = vmatprep.subr.bf16.mxu0 %v3930_v55  ;;  %v2349_v29 = vadd.f32 %v2348_v57, %v2308_v24  ;;  %v3957_v53 = vld [vmem:[#allocation10 + $0x108] sm:$0xff]   ;;  %v3958_v54 = vld [vmem:[#allocation10 + $0x140] sm:$0xff]   ;;  %v968_v57 = vrot.slane %v4261_v51, %v279_v40  ;;  %v3963_v40 = vld [vmem:[#allocation10 + $0x1b0] sm:$0xff]  }
 0x2b1   :  { %v2311_v19 = vpop.f32.mrf.mxu1  ;;  %v2352_v0 = vpop.f32.mrf.mxu0  ;;  %v3959_v55 = vld [vmem:[#allocation10 + $0x100] sm:$0xff]  }
 0x2b2   :  { %v2351_v5 = vadd.f32 %v2350_v60, %v2310_v1  ;;  %3709 = vmatpush3.bf16.msra.mxu1 %v3915_v58  ;;  %v2601_v33 = vmax.f32 %v2349_v29, 0.0  ;;  %v3975_v24 = vld [vmem:[#allocation10 + $0x180] sm:$0xff]  }
 0x2b3   :  { %v2312_v6 = vpop.f32.mrf.mxu1  ;;  %v2353_v2 = vpop.f32.mrf.mxu0  ;;  %3710 = vmatprep.subr.bf16.mxu1 %v3916_v61  ;;  %3731 = vmatpush3.bf16.msra.mxu0 %v3931_v62 }
 0x2b4   :  { %v2602_v8 = vmax.f32 %v2351_v5, 0.0  ;;  %3732 = vmatprep.subr.bf16.mxu0 %v3932_v63  ;;  %v2609_v39 = vpack.c.bf16 %v2601_v33, %v2601_v33 }
 0x2b6   :  { %v2610_v10 = vpack.c.bf16 %v2602_v8, %v2602_v8  ;;  %3711 = vmatpush3.bf16.msra.mxu1 %v3917_v3 }
 0x2b7   :  { %3712 = vmatprep.subr.bf16.mxu1 %v3918_v4  ;;  %3733 = vmatpush3.bf16.msra.mxu0 %v3933_v7  ;;  %v3961_v7 = vld [vmem:[#allocation10 + $0x1b8] sm:$0xff]  }
 0x2b8   :  { %3168 = vmatprep.mubr.bf16.mxu1 %v2610_v10  ;;  %3734 = vmatprep.subr.bf16.mxu0 %v3934_v9  ;;  %v3962_v9 = vld [vmem:[#allocation10 + $0x1f0] sm:$0xff]   ;;  %v3964_v10 = vld [vmem:[#allocation10 + $0x1e8] sm:$0xff]  }
 0x2ba   :  { %3713 = vmatpush3.bf16.msra.mxu1 %v3919_v11  ;;  %v3965_v11 = vld [vmem:[#allocation10 + $0x1a8] sm:$0xff]  }
 0x2bb   :  { %3714 = vmatprep.subr.bf16.mxu1 %v3920_v12  ;;  %3735 = vmatpush3.bf16.msra.mxu0 %v3935_v13  ;;  %v3966_v12 = vld [vmem:[#allocation10 + $0x1e0] sm:$0xff]  }
 0x2bc   :  { %3736 = vmatprep.subr.bf16.mxu0 %v3936_v14  ;;  %v3967_v13 = vld [vmem:[#allocation10 + $0x1a0] sm:$0xff]   ;;  %v3968_v14 = vld [vmem:[#allocation10 + $0x1d8] sm:$0xff]  }
 0x2be   :  { %3715 = vmatpush3.bf16.msra.mxu1 %v3921_v15  ;;  %v3969_v15 = vld [vmem:[#allocation10 + $0x198] sm:$0xff]  }
 0x2bf   :  { %3716 = vmatprep.subr.bf16.mxu1 %v3922_v20  ;;  %3737 = vmatpush3.bf16.msra.mxu0 %v3937_v21  ;;  %v3971_v20 = vld [vmem:[#allocation10 + $0x190] sm:$0xff]   ;;  %v3972_v21 = vld [vmem:[#allocation10 + $0x1c8] sm:$0xff]  }
 0x2c0   :  { %3738 = vmatprep.subr.bf16.mxu0 %v3938_v22  ;;  %v3973_v22 = vld [vmem:[#allocation10 + $0x188] sm:$0xff]  }
 0x2c2   :  { %3717 = vmatpush3.bf16.msra.mxu1 %v3923_v23  ;;  %v3974_v23 = vld [vmem:[#allocation10 + $0x1c0] sm:$0xff]  }
 0x2c3   :  { %3718 = vmatprep.subr.bf16.mxu1 %v3924_v25  ;;  %3739 = vmatpush3.bf16.msra.mxu0 %v3939_v26  ;;  %v971_v25 = vsub.s32 4, %v4215_v16  ;;  %v975_v26 = vsub.s32 5, %v4215_v16 }
 0x2c4   :  { %3740 = vmatprep.subr.bf16.mxu0 %v3940_v27 }
 0x2c5   :  { %v972_v27 = vrot.slane %v4261_v51, %v971_v25 }
 0x2c6   :  { %3719 = vmatpush3.bf16.msra.mxu1 %v3925_v28  ;;  %v976_v28 = vrot.slane %v4261_v51, %v975_v26 }
 0x2c7   :  { %3720 = vmatprep.subr.bf16.mxu1 %v3926_v17  ;;  %3741 = vmatpush3.bf16.msra.mxu0 %v3941_v30 }
 0x2c8   :  { %3742 = vmatprep.subr.bf16.mxu0 %v3942_v31 }
 0x2ca   :  { %3721 = vmatpush3.bf16.msra.mxu1 %v3927_v32 }
 0x2cb   :  { %3743 = vmatpush3.bf16.msra.mxu0 %v3943_v34  ;;  %3750 = vmatprep.subr.bf16.mxu1 %v3944_v35 }
 0x2cc   :  { %3772 = vmatprep.subr.bf16.mxu0 %v3960_v36 }
 0x2cd   :  { %3169 = vmatmul.mubr.bf16.vlgmr.msra.gmra.mxu1 %v2609_v39 }
 0x2ce   :  { %3751 = vmatpush3.bf16.msra.mxu1 %v3945_v37 }
 0x2cf   :  { %3752 = vmatprep.subr.bf16.mxu1 %v3946_v41 }
 0x2d2   :  { %3753 = vmatpush3.bf16.msra.mxu1 %v3947_v42 }
 0x2d3   :  { %3754 = vmatprep.subr.bf16.mxu1 %v3948_v43 }
 0x2d6   :  { %3755 = vmatpush3.bf16.msra.mxu1 %v3949_v44 }
 0x2d7   :  { %3756 = vmatprep.subr.bf16.mxu1 %v3950_v45 }
 0x2da   :  { %3757 = vmatpush3.bf16.msra.mxu1 %v3951_v46  ;;  %v979_v46 = vsub.s32 6, %v4215_v16 }
 0x2db   :  { %3758 = vmatprep.subr.bf16.mxu1 %v3952_v47  ;;  %v983_v47 = vsub.s32 7, %v4215_v16 }
 0x2de   :  { %3759 = vmatpush3.bf16.msra.mxu1 %v3953_v48  ;;  %v980_v48 = vrot.slane %v4261_v51, %v979_v46 }
 0x2df   :  { %3760 = vmatprep.subr.bf16.mxu1 %v3954_v49  ;;  %v984_v49 = vrot.slane %v4261_v51, %v983_v47 }
 0x2e2   :  { %3761 = vmatpush3.bf16.msra.mxu1 %v3955_v50 }
 0x2e3   :  { %3762 = vmatprep.subr.bf16.mxu1 %v3956_v52 }
 0x2e6   :  { %3763 = vmatpush3.bf16.msra.mxu1 %v3957_v53 }
 0x2e7   :  { %3764 = vmatprep.subr.bf16.mxu1 %v3958_v54 }
 0x2ea   :  { %3765 = vmatpush3.bf16.msra.mxu1 %v3959_v55 }
 0x2ed   :  { %v2389_v58 = vpop.f32.mrf.mxu1  ;;  %v2430_v59 = vpop.f32.mrf.mxu0 }
 0x2ee   :  { %v2390_v60 = vadd.f32 %v2389_v58, %v964_v56 }
 0x2ef   :  { %v2391_v61 = vpop.f32.mrf.mxu1  ;;  %v2432_v62 = vpop.f32.mrf.mxu0 }
 0x2f0   :  { %v2431_v1 = vadd.f32 %v2430_v59, %v2390_v60  ;;  %v2392_v63 = vadd.f32 %v2391_v61, %v968_v57 }
 0x2f1   :  { %v2393_v19 = vpop.f32.mrf.mxu1  ;;  %v2434_v0 = vpop.f32.mrf.mxu0 }
 0x2f2   :  { %v2433_v5 = vadd.f32 %v2432_v62, %v2392_v63  ;;  %v2603_v3 = vmax.f32 %v2431_v1, 0.0 }
 0x2f3   :  { %v2394_v6 = vpop.f32.mrf.mxu1  ;;  %v2435_v2 = vpop.f32.mrf.mxu0 }
 0x2f4   :  { %v2604_v4 = vmax.f32 %v2433_v5, 0.0  ;;  %v2611_v8 = vpack.c.bf16 %v2603_v3, %v2603_v3  ;;  %v3641_v2 = vld [vmem:[#allocation11] ss:$0 sm:$0xff] }
 0x2f6   :  { %v2612_v38 = vpack.c.bf16 %v2604_v4, %v2604_v4 }
 0x2f8   :  { %3208 = vmatprep.mubr.bf16.mxu0 %v2612_v38 }
 0x2f9   :  { %3209 = vmatmul.mubr.bf16.vlgmr.msra.gmra.mxu0 %v2611_v8 }
 0x2fa   :  { %3773 = vmatpush3.bf16.msra.mxu0 %v3961_v7 }
 0x2fb   :  { %3774 = vmatprep.subr.bf16.mxu0 %v3962_v9 }
 0x2fe   :  { %3775 = vmatpush3.bf16.msra.mxu0 %v3963_v40 }
 0x2ff   :  { %3776 = vmatprep.subr.bf16.mxu0 %v3964_v10 }
 0x302   :  { %3777 = vmatpush3.bf16.msra.mxu0 %v3965_v11 }
 0x303   :  { %3778 = vmatprep.subr.bf16.mxu0 %v3966_v12 }
 0x306   :  { %3779 = vmatpush3.bf16.msra.mxu0 %v3967_v13 }
 0x307   :  { %3780 = vmatprep.subr.bf16.mxu0 %v3968_v14 }
 0x30a   :  { %3781 = vmatpush3.bf16.msra.mxu0 %v3969_v15 }
 0x30b   :  { %3782 = vmatprep.subr.bf16.mxu0 %v3970_v18 }
 0x30e   :  { %3783 = vmatpush3.bf16.msra.mxu0 %v3971_v20 }
 0x30f   :  { %3784 = vmatprep.subr.bf16.mxu0 %v3972_v21 }
 0x312   :  { %3785 = vmatpush3.bf16.msra.mxu0 %v3973_v22 }
 0x313   :  { %3786 = vmatprep.subr.bf16.mxu0 %v3974_v23 }
 0x316   :  { %3787 = vmatpush3.bf16.msra.mxu0 %v3975_v24 }
 0x32d   :  { %v2471_v29 = vpop.f32.mrf.mxu1 }
 0x32e   :  { %v2472_v17 = vadd.f32 %v2471_v29, %v972_v27  ;;  %v2512_v30 = vpop.f32.mrf.mxu0 }
 0x32f   :  { %v2473_v31 = vpop.f32.mrf.mxu1 }
 0x330   :  { %v2513_v32 = vadd.f32 %v2512_v30, %v2472_v17  ;;  %v2474_v33 = vadd.f32 %v2473_v31, %v976_v28  ;;  %v2514_v34 = vpop.f32.mrf.mxu0 }
 0x331   :  { %v2475_v35 = vpop.f32.mrf.mxu1 }
 0x332   :  { %v2515_v36 = vadd.f32 %v2514_v34, %v2474_v33  ;;  %v2516_v37 = vpop.f32.mrf.mxu0  ;;  %v2605_v39 = vmax.f32 %v2513_v32, 0.0 }
 0x333   :  { %v2476_v41 = vpop.f32.mrf.mxu1 }
 0x334   :  { %v2606_v42 = vmax.f32 %v2515_v36, 0.0  ;;  %v2517_v43 = vpop.f32.mrf.mxu0  ;;  %v2613_v45 = vpack.c.bf16 %v2605_v39, %v2605_v39 }
 0x336   :  { %v2614_v44 = vpack.c.bf16 %v2606_v42, %v2606_v42 }
 0x338   :  { %3248 = vmatprep.mubr.bf16.mxu1 %v2614_v44 }
 0x339   :  { %3249 = vmatmul.mubr.bf16.vlgmr.msra.gmra.mxu1 %v2613_v45 }
 0x36d   :  { %v2553_v50 = vpop.f32.mrf.mxu1 }
 0x36e   :  { %v2554_v52 = vadd.f32 %v2553_v50, %v980_v48  ;;  %v2594_v53 = vpop.f32.mrf.mxu0 }
 0x36f   :  { %v2555_v54 = vpop.f32.mrf.mxu1 }
 0x370   :  { %v2595_v55 = vadd.f32 %v2594_v53, %v2554_v52  ;;  %v2556_v56 = vadd.f32 %v2555_v54, %v984_v49  ;;  %v2596_v57 = vpop.f32.mrf.mxu0 }
 0x371   :  { %v2557_v58 = vpop.f32.mrf.mxu1 }
 0x372   :  { %v2597_v59 = vadd.f32 %v2596_v57, %v2556_v56  ;;  %v2598_v60 = vpop.f32.mrf.mxu0  ;;  %v2607_v61 = vmax.f32 %v2595_v55, 0.0 }
 0x373   :  { %v2558_v62 = vpop.f32.mrf.mxu1 }
 0x374   :  { %v2608_v1 = vmax.f32 %v2597_v59, 0.0  ;;  %v2599_v63 = vpop.f32.mrf.mxu0  ;;  %v2615_v16 = vpack.c.bf16 %v2607_v61, %v2607_v61 }
 0x376   :  { %v2616_v19 = vpack.c.bf16 %v2608_v1, %v2608_v1 }
 0x378   :  { %3288 = vmatprep.mubr.bf16.mxu0 %v2616_v19 }
 0x379   :  { %3289 = vmatmul.mubr.bf16.vlgmr.msra.gmra.mxu0 %v2615_v16 }
 0x38d   :  { %v3722_v0 = vpop.f32.mrf.mxu1 }
 0x38f   :  { %v3723_v51 = vpop.f32.mrf.mxu1 }
 0x390   :  { %v3724_v5 = vadd.f32 %v3723_v51, %v3722_v0 }
 0x391   :  { %v3725_v3 = vpop.f32.mrf.mxu1 }
 0x392   :  { %v3171_v7 = vadd.f32 %v3724_v5, %v3641_v2 }
 0x393   :  { %v3726_v6 = vpop.f32.mrf.mxu1 }
 0x3b9   :  { %v3744_v4 = vpop.f32.mrf.mxu0 }
 0x3bb   :  { %v3745_v38 = vpop.f32.mrf.mxu0 }
 0x3bc   :  { %v3746_v8 = vadd.f32 %v3745_v38, %v3744_v4 }
 0x3bd   :  { %v3747_v9 = vpop.f32.mrf.mxu0 }
 0x3be   :  { %v3211_v40 = vadd.f32 %v3746_v8, %v3171_v7 }
 0x3bf   :  { %v3748_v10 = vpop.f32.mrf.mxu0 }
 0x3f9   :  { %v3766_v11 = vpop.f32.mrf.mxu1 }
 0x3fb   :  { %v3767_v12 = vpop.f32.mrf.mxu1 }
 0x3fc   :  { %v3768_v13 = vadd.f32 %v3767_v12, %v3766_v11 }
 0x3fd   :  { %v3769_v14 = vpop.f32.mrf.mxu1 }
 0x3fe   :  { %v3251_v15 = vadd.f32 %v3768_v13, %v3211_v40 }
 0x3ff   :  { %v3770_v18 = vpop.f32.mrf.mxu1 }
 0x439   :  { %v3788_v20 = vpop.f32.mrf.mxu0 }
 0x43b   :  { %v3789_v21 = vpop.f32.mrf.mxu0 }
 0x43c   :  { %v3790_v22 = vadd.f32 %v3789_v21, %v3788_v20 }
 0x43d   :  { %v3791_v23 = vpop.f32.mrf.mxu0 }
 0x43e   :  { %v3291_v24 = vadd.f32 %v3790_v22, %v3251_v15 }
 0x43f   :  { %v3792_v25 = vpop.f32.mrf.mxu0 }
 0x440   :  { %3976 = vtanh.f32 %v3291_v24 }
 0x44d   :  { %v3977_v26 = vpop.eup %3976 }
 0x44e   :  { %3297 = vst [vmem:[#allocation13] sm:$0xff] %v3977_v26 }
 0x44f   :  { %4109 = shalt.err (!%p4106_p6)
}
 0x450   :  { %3307 = dma.vmem_to_hbm [thread:$0]  %s3305_s24, 128, %s4295_s9, [#allocation4]  }
 0x451   :  { %4126 = dma.done.wait [#allocation4], 128  }
 0x452   :  { %4127 = vsyncadd [#allocation4], 4294967168 }
 0x453   :  { %3311 = vsyncpa [#allocation3], 1 }
 0x454   :  { %3312 = vsyncpa [#allocation6], 1 }
 0x455   :  { %3313 = vsyncpa [#allocation9], 1 }
 0x456   :  { %3314 = vsyncpa [#allocation12], 1 }
 0x457   :  { %3315 = vsyncpa [#allocation4], 1 }

</bundles_post_ra>
